<compile_context>
chip_gen: v7x
topology: tpu7x:2x2x1
jax: 0.10.0
libtpu: 0.0.40
codegen_flags: <defaults>
</compile_context>

<pallas_src>
import functools

import jax
import jax.numpy as jnp
from jax.experimental import pallas as pl
from jax.experimental.pallas import tpu as pltpu

_LANES = 128
_GROUPS = _LANES // 4   # 32 batch elements per 128-lane row
_SUBLANES = 8


def _round_up(x, m):
    return ((x + m - 1) // m) * m


def ff_kernel(x_ref, a1_ref, c1_ref, a2_ref, c2_ref, a4_ref, c4_ref, o_ref):
    """x_ref: (ts, 128) f32 — 32 batch elems x 4 interleaved features per row.

    Each layer is one MXU matmul against a block-diagonal lane-mixing matrix
    (the folded 4-wide transpose), a bias add and a tanh (EUP).  The output
    block is (ts, 32): one value per batch element, already in batch order.
    """
    dot = functools.partial(jnp.dot, preferred_element_type=jnp.float32,
                            precision=jax.lax.Precision.HIGHEST)
    v = x_ref[...]
    t1 = jnp.tanh(dot(v, a1_ref[...]) + c1_ref[...])
    t2 = jnp.tanh(dot(t1, a2_ref[...]) + c2_ref[...])
    y = 0.5 * jnp.tanh(dot(t2, a4_ref[...]) + c4_ref[...]) + 0.5
    # TODO(synk): dropout path (dropout=True) not implemented; the default
    # module config (dropout=False) is matched exactly.
    o_ref[...] = y.astype(o_ref.dtype)


@functools.partial(jax.jit, static_argnames=("block_batch",))
def ff_forward(x, w1, b1, w2, b2, w4, b4, *, block_batch=131072):
    """x: (B, 4) f32.  Weights in PyTorch layout: w (out, in), b (out,)."""
    B, F = x.shape
    assert F == 4, "FF expects 4 input features"
    x = x.astype(jnp.float32)

    # --- sigmoid -> tanh folding on the tiny per-layer weights (exact) ------
    # sigmoid(z) = 0.5*tanh(z/2) + 0.5 ; each hidden layer's 0.5*t + 0.5 is
    # folded into the following layer's weight/bias.
    m1 = (0.5 * w1.T).astype(jnp.float32)                       # (4, 4)
    c1 = (0.5 * b1).astype(jnp.float32)                         # (4,)
    m2 = (0.25 * w2.T).astype(jnp.float32)                      # (4, 4)
    c2 = (0.25 * jnp.sum(w2, axis=1) + 0.5 * b2).astype(jnp.float32)
    m4 = (0.25 * w4.T).astype(jnp.float32)                      # (4, 1)
    c4 = (0.25 * jnp.sum(w4, axis=1) + 0.5 * b4).astype(jnp.float32)

    # --- fold the 4-wide transpose into block-diagonal lane-mixing weights --
    eye = jnp.eye(_GROUPS, dtype=jnp.float32)
    a1 = jnp.kron(eye, m1)                                      # (128, 128)
    a2 = jnp.kron(eye, m2)                                      # (128, 128)
    a4 = jnp.kron(eye, m4)                                      # (128, 32)
    c1v = jnp.tile(c1, _GROUPS).reshape(1, _LANES)
    c2v = jnp.tile(c2, _GROUPS).reshape(1, _LANES)
    c4v = jnp.tile(c4, _GROUPS).reshape(1, _GROUPS)

    # --- reinterpret x (B, 4) row-major as (rows, 128); no transpose pass ---
    rows = pl.cdiv(B, _GROUPS)
    n_pad = rows * _GROUPS - B
    xf = x.reshape(-1)
    if n_pad:                          # tiny tail pad only when B % 32 != 0
        xf = jnp.pad(xf, (0, 4 * n_pad))
    xr = xf.reshape(rows, _LANES)

    # --- adaptive lane-dense batch blocks ------------------------------------
    # Target ~block_batch elements per step (2 MiB x-block at the default),
    # but keep >= 2 grid steps when possible (megacore sharding on v7x) and
    # never blow up small B: partial edge blocks handle the remainder.
    ts_target = max(_SUBLANES,
                    (block_batch // _GROUPS // _SUBLANES) * _SUBLANES)
    ts = max(_SUBLANES,
             min(ts_target, _round_up(pl.cdiv(rows, 2), _SUBLANES)))
    grid = (pl.cdiv(rows, ts),)

    out = pl.pallas_call(
        ff_kernel,
        out_shape=jax.ShapeDtypeStruct((rows, _GROUPS), jnp.float32),
        grid=grid,
        in_specs=[
            pl.BlockSpec((ts, _LANES), lambda i: (i, 0)),        # streamed x
            pl.BlockSpec((_LANES, _LANES), lambda i: (0, 0)),    # a1 (resident)
            pl.BlockSpec((1, _LANES), lambda i: (0, 0)),         # c1
            pl.BlockSpec((_LANES, _LANES), lambda i: (0, 0)),    # a2
            pl.BlockSpec((1, _LANES), lambda i: (0, 0)),         # c2
            pl.BlockSpec((_LANES, _GROUPS), lambda i: (0, 0)),   # a4
            pl.BlockSpec((1, _GROUPS), lambda i: (0, 0)),        # c4
        ],
        out_specs=pl.BlockSpec((ts, _GROUPS), lambda i: (i, 0)),
        compiler_params=pltpu.CompilerParams(
            dimension_semantics=("parallel",),
            vmem_limit_bytes=48 * 1024 * 1024),
    )(xr, a1, c1v, a2, c2v, a4, c4v)

    # (rows, 32) row-major is already batch order -> (B, 1); the slice is a
    # no-op when B % 32 == 0.
    return out.reshape(-1)[:B].reshape(B, 1)


def init_params(key):
    """nn.Linear default init: uniform(+/- 1/sqrt(fan_in)), PyTorch layout."""
    ks = jax.random.split(key, 6)

    def linear(kw, kb, fan_in, fan_out):
        bound = 1.0 / float(fan_in) ** 0.5
        w = jax.random.uniform(kw, (fan_out, fan_in), jnp.float32, -bound, bound)
        b = jax.random.uniform(kb, (fan_out,), jnp.float32, -bound, bound)
        return w, b

    w1, b1 = linear(ks[0], ks[1], 4, 4)
    w2, b2 = linear(ks[2], ks[3], 4, 4)
    w4, b4 = linear(ks[4], ks[5], 4, 1)
    return w1, b1, w2, b2, w4, b4


if __name__ == "__main__":
    key = jax.random.PRNGKey(0)
    k_x, k_p = jax.random.split(key)

    B = 2000  # exercises a 2-step grid, a partial edge block and tail padding
    x = jax.random.normal(k_x, (B, 4), dtype=jnp.float32)
    w1, b1, w2, b2, w4, b4 = init_params(k_p)

    out = ff_forward(x, w1, b1, w2, b2, w4, b4)
    out = jax.block_until_ready(out)

    # Reference in plain JAX (same math, exact sigmoid).
    ref = jax.nn.sigmoid(x @ w1.T + b1)
    ref = jax.nn.sigmoid(ref @ w2.T + b2)
    ref = jax.nn.sigmoid(ref @ w4.T + b4)

    assert out.shape == (B, 1)
    max_err = float(jnp.max(jnp.abs(out - ref)))
    assert jnp.allclose(out, ref, atol=2e-3, rtol=2e-3), max_err

    print("KERNEL_OK")
</pallas_src>

<mosaic_0001>
module attributes {stable_mosaic.version = 11 : i64} {
  func.func @ff_kernel(%arg0: i32, %arg1: memref<32x128xf32, #tpu.memory_space<vmem>>, %arg2: memref<128x128xf32, #tpu.memory_space<vmem>>, %arg3: memref<1x128xf32, #tpu.memory_space<vmem>>, %arg4: memref<128x128xf32, #tpu.memory_space<vmem>>, %arg5: memref<1x128xf32, #tpu.memory_space<vmem>>, %arg6: memref<128x32xf32, #tpu.memory_space<vmem>>, %arg7: memref<1x32xf32, #tpu.memory_space<vmem>>, %arg8: memref<32x32xf32, #tpu.memory_space<vmem>>) attributes {dimension_semantics = [#tpu.dimension_semantics<parallel>], iteration_bounds = array<i64: 2>, scalar_prefetch = 0 : i64, scratch_operands = 0 : i64, tpu.core_type = #tpu.core_type<tc>, window_params = [{transform_indices = @transform_0, window_bounds = array<i64: 32, 128>}, {pipeline_mode = #tpu.pipeline_mode<synchronous>, transform_indices = @transform_1, window_bounds = array<i64: 128, 128>}, {pipeline_mode = #tpu.pipeline_mode<synchronous>, transform_indices = @transform_2, window_bounds = array<i64: 1, 128>}, {pipeline_mode = #tpu.pipeline_mode<synchronous>, transform_indices = @transform_3, window_bounds = array<i64: 128, 128>}, {pipeline_mode = #tpu.pipeline_mode<synchronous>, transform_indices = @transform_4, window_bounds = array<i64: 1, 128>}, {pipeline_mode = #tpu.pipeline_mode<synchronous>, transform_indices = @transform_5, window_bounds = array<i64: 128, 32>}, {pipeline_mode = #tpu.pipeline_mode<synchronous>, transform_indices = @transform_6, window_bounds = array<i64: 1, 32>}, {transform_indices = @transform_7, window_bounds = array<i64: 32, 32>}]} {
    %c0 = arith.constant 0 : index
    %c0_0 = arith.constant 0 : index
    %0 = vector.load %arg1[%c0, %c0_0] : memref<32x128xf32, #tpu.memory_space<vmem>>, vector<32x128xf32>
    %c0_1 = arith.constant 0 : index
    %c0_2 = arith.constant 0 : index
    %1 = vector.load %arg2[%c0_1, %c0_2] : memref<128x128xf32, #tpu.memory_space<vmem>>, vector<128x128xf32>
    %cst = arith.constant dense<0.000000e+00> : vector<32x128xf32>
    %2 = tpu.matmul %0, %1, %cst {dimension_numbers = #tpu.dot_dimension_numbers<[1], [0], [0], [1], [0, 0, 1, 1], [], []>, precision = #tpu.contract_precision<fp32>} : vector<32x128xf32>, vector<128x128xf32>, vector<32x128xf32> -> vector<32x128xf32>
    %c0_3 = arith.constant 0 : index
    %c0_4 = arith.constant 0 : index
    %3 = vector.load %arg3[%c0_3, %c0_4] : memref<1x128xf32, #tpu.memory_space<vmem>>, vector<1x128xf32>
    %4 = vector.broadcast %3 : vector<1x128xf32> to vector<32x128xf32>
    %5 = arith.addf %2, %4 : vector<32x128xf32>
    %6 = math.tanh %5 : vector<32x128xf32>
    %c0_5 = arith.constant 0 : index
    %c0_6 = arith.constant 0 : index
    %7 = vector.load %arg4[%c0_5, %c0_6] : memref<128x128xf32, #tpu.memory_space<vmem>>, vector<128x128xf32>
    %cst_7 = arith.constant dense<0.000000e+00> : vector<32x128xf32>
    %8 = tpu.matmul %6, %7, %cst_7 {dimension_numbers = #tpu.dot_dimension_numbers<[1], [0], [0], [1], [0, 0, 1, 1], [], []>, precision = #tpu.contract_precision<fp32>} : vector<32x128xf32>, vector<128x128xf32>, vector<32x128xf32> -> vector<32x128xf32>
    %c0_8 = arith.constant 0 : index
    %c0_9 = arith.constant 0 : index
    %9 = vector.load %arg5[%c0_8, %c0_9] : memref<1x128xf32, #tpu.memory_space<vmem>>, vector<1x128xf32>
    %10 = vector.broadcast %9 : vector<1x128xf32> to vector<32x128xf32>
    %11 = arith.addf %8, %10 : vector<32x128xf32>
    %12 = math.tanh %11 : vector<32x128xf32>
    %c0_10 = arith.constant 0 : index
    %c0_11 = arith.constant 0 : index
    %13 = vector.load %arg6[%c0_10, %c0_11] : memref<128x32xf32, #tpu.memory_space<vmem>>, vector<128x32xf32>
    %cst_12 = arith.constant dense<0.000000e+00> : vector<32x32xf32>
    %14 = tpu.matmul %12, %13, %cst_12 {dimension_numbers = #tpu.dot_dimension_numbers<[1], [0], [0], [1], [0, 0, 1, 1], [], []>, precision = #tpu.contract_precision<fp32>} : vector<32x128xf32>, vector<128x32xf32>, vector<32x32xf32> -> vector<32x32xf32>
    %c0_13 = arith.constant 0 : index
    %c0_14 = arith.constant 0 : index
    %15 = vector.load %arg7[%c0_13, %c0_14] : memref<1x32xf32, #tpu.memory_space<vmem>>, vector<1x32xf32>
    %16 = vector.broadcast %15 : vector<1x32xf32> to vector<32x32xf32>
    %17 = arith.addf %14, %16 : vector<32x32xf32>
    %18 = math.tanh %17 : vector<32x32xf32>
    %cst_15 = arith.constant 5.000000e-01 : f32
    %19 = vector.broadcast %cst_15 : f32 to vector<32x32xf32>
    %20 = arith.mulf %19, %18 : vector<32x32xf32>
    %cst_16 = arith.constant 5.000000e-01 : f32
    %21 = vector.broadcast %cst_16 : f32 to vector<32x32xf32>
    %22 = arith.addf %20, %21 : vector<32x32xf32>
    %c0_17 = arith.constant 0 : index
    %c0_18 = arith.constant 0 : index
    %23 = vector.load %arg8[%c0_17, %c0_18] : memref<32x32xf32, #tpu.memory_space<vmem>>, vector<32x32xf32>
    tpu.vector_store %arg8[%c0_17, %c0_18], %22 {strides = array<i32>} : memref<32x32xf32, #tpu.memory_space<vmem>>, vector<32x32xf32>,
    return
  }
  func.func @transform_0(%arg0: i32) -> (i32, i32) {
    %c0_i32 = arith.constant 0 : i32
    %c0_i32_0 = arith.constant 0 : i32
    return %arg0, %c0_i32 : i32, i32
  }
  func.func @transform_1(%arg0: i32) -> (i32, i32) {
    %c0_i32 = arith.constant 0 : i32
    %c0_i32_0 = arith.constant 0 : i32
    %c0_i32_1 = arith.constant 0 : i32
    return %c0_i32, %c0_i32_0 : i32, i32
  }
  func.func @transform_2(%arg0: i32) -> (i32, i32) {
    %c0_i32 = arith.constant 0 : i32
    %c0_i32_0 = arith.constant 0 : i32
    %c0_i32_1 = arith.constant 0 : i32
    return %c0_i32, %c0_i32_0 : i32, i32
  }
  func.func @transform_3(%arg0: i32) -> (i32, i32) {
    %c0_i32 = arith.constant 0 : i32
    %c0_i32_0 = arith.constant 0 : i32
    %c0_i32_1 = arith.constant 0 : i32
    return %c0_i32, %c0_i32_0 : i32, i32
  }
  func.func @transform_4(%arg0: i32) -> (i32, i32) {
    %c0_i32 = arith.constant 0 : i32
    %c0_i32_0 = arith.constant 0 : i32
    %c0_i32_1 = arith.constant 0 : i32
    return %c0_i32, %c0_i32_0 : i32, i32
  }
  func.func @transform_5(%arg0: i32) -> (i32, i32) {
    %c0_i32 = arith.constant 0 : i32
    %c0_i32_0 = arith.constant 0 : i32
    %c0_i32_1 = arith.constant 0 : i32
    return %c0_i32, %c0_i32_0 : i32, i32
  }
  func.func @transform_6(%arg0: i32) -> (i32, i32) {
    %c0_i32 = arith.constant 0 : i32
    %c0_i32_0 = arith.constant 0 : i32
    %c0_i32_1 = arith.constant 0 : i32
    return %c0_i32, %c0_i32_0 : i32, i32
  }
  func.func @transform_7(%arg0: i32) -> (i32, i32) {
    %c0_i32 = arith.constant 0 : i32
    %c0_i32_0 = arith.constant 0 : i32
    return %arg0, %c0_i32 : i32, i32
  }
}

</mosaic_0001>

<bundles_post_ra>
// kernel: tile.24
= control target key start
LH: loop header
LB: loop body
LE: loop exit
PB: predicated region body
PF: predicated region fallthrough
CT: control target
= control target key end

     0   :  { %s259_s10 = smov 124   ;;  %s260_s11 = smov 116   ;;  %vm3_vm0 = vcmask 31744   ;;  %vm9_vm1 = vcmask 1048544   ;;  %vm15_vm2 = vcmask 1015744   ;;  %vm21_vm3 = vcmask 982944   ;;  %s399_s0 = inlined_call_operand.vmem [shape: f32[32,4], index: 0, kind: input, shape index: {}]   ;;  %s400_s1 = inlined_call_operand.vmem [shape: f32[1,128], index: 1, kind: output, shape index: {}]  }
   0x1   :  { %v197_v0 = vld [vmem:[%s399_s0 + $0x1f] sm:$0x1]   ;;  %v199_v1 = vld [vmem:[%s399_s0 + $0x1d] sm:$0x1]   ;;  %v198_v2 = vld [vmem:[%s399_s0 + $0x1e] sm:$0x1]  }
   0x2   :  { %7 = vrot.lane.b32.xlu0 %v197_v0, %s259_s10  ;;  %19 = vrot.lane.b32.xlu1 %v199_v1, %s260_s11  ;;  %v200_v3 = vld [vmem:[%s399_s0 + $0x1c] sm:$0x1]   ;;  %s261_s16 = smov 120   ;;  %s262_s17 = smov 112   ;;  %v201_v4 = vld [vmem:[%s399_s0 + $0x1b] sm:$0x1]  }
   0x3   :  { %v202_v5 = vld [vmem:[%s399_s0 + $0x1a] sm:$0x1]   ;;  %s263_s22 = smov 108   ;;  %s264_s23 = smov 104   ;;  %v203_v6 = vld [vmem:[%s399_s0 + $0x19] sm:$0x1]  }
   0x4   :  { %v204_v7 = vld [vmem:[%s399_s0 + $0x18] sm:$0x1]   ;;  %s265_s28 = smov 100   ;;  %s266_s29 = smov 96   ;;  %v205_v8 = vld [vmem:[%s399_s0 + $0x17] sm:$0x1]  }
   0x5   :  { %v206_v9 = vld [vmem:[%s399_s0 + $0x16] sm:$0x1]   ;;  %v2_v10 = vld [vmem:[%s399_s0] sm:$0x1]   ;;  %s267_s7 = smov 92   ;;  %s268_s8 = smov 88  }
   0x6   :  { %13 = vrot.lane.b32.xlu0 %v198_v2, %s261_s16  ;;  %25 = vrot.lane.b32.xlu1 %v200_v3, %s262_s17  ;;  %4 = vst.msk [vmem:[#allocation0] sm:$0x1] %vm3_vm0, %v2_v10   ;;  %v207_v11 = vld [vmem:[%s399_s0 + $0x15] sm:$0x1]   ;;  %v208_v12 = vld [vmem:[%s399_s0 + $0x14] sm:$0x1]  }
   0x7   :  { %s269_s13 = smov 84   ;;  %s270_s14 = smov 80   ;;  %v209_v13 = vld [vmem:[%s399_s0 + $0x13] sm:$0x1]   ;;  %v210_v14 = vld [vmem:[%s399_s0 + $0x12] sm:$0x1]  }
   0x8   :  { %s271_s19 = smov 76   ;;  %s272_s20 = smov 72   ;;  %v211_v15 = vld [vmem:[%s399_s0 + $0x11] sm:$0x1]   ;;  %v212_v16 = vld [vmem:[%s399_s0 + $0x10] sm:$0x1]  }
   0x9   :  { %s273_s25 = smov 68   ;;  %s274_s26 = smov 64   ;;  %v213_v17 = vld [vmem:[%s399_s0 + $0xf] sm:$0x1]   ;;  %v214_v18 = vld [vmem:[%s399_s0 + $0xe] sm:$0x1]  }
   0xa   :  { %31 = vrot.lane.b32.xlu0 %v201_v4, %s263_s22  ;;  %37 = vrot.lane.b32.xlu1 %v202_v5, %s264_s23  ;;  %s275_s2 = smov 60   ;;  %s276_s3 = smov 56   ;;  %v215_v19 = vld [vmem:[%s399_s0 + $0xd] sm:$0x1]   ;;  %v216_v20 = vld [vmem:[%s399_s0 + $0xc] sm:$0x1]  }
   0xb   :  { %s278_s9 = smov 48   ;;  %v217_v21 = vld [vmem:[%s399_s0 + $0xb] sm:$0x1]   ;;  %v218_v22 = vld [vmem:[%s399_s0 + $0xa] sm:$0x1]   ;;  %s280_s15 = smov 40  }
   0xc   :  { %v219_v23 = vld [vmem:[%s399_s0 + $0x9] sm:$0x1]   ;;  %v220_v24 = vld [vmem:[%s399_s0 + $0x8] sm:$0x1]   ;;  %s282_s21 = smov 32   ;;  %s284_s27 = smov 24  }
   0xd   :  { %v221_v25 = vld [vmem:[%s399_s0 + $0x7] sm:$0x1]   ;;  %v222_v26 = vld [vmem:[%s399_s0 + $0x6] sm:$0x1]   ;;  %v223_v27 = vld [vmem:[%s399_s0 + $0x5] sm:$0x1]  }
   0xe   :  { %43 = vrot.lane.b32.xlu0 %v203_v6, %s265_s28  ;;  %49 = vrot.lane.b32.xlu1 %v204_v7, %s266_s29  ;;  %v224_v28 = vld [vmem:[%s399_s0 + $0x4] sm:$0x1]   ;;  %s286_s4 = smov 16   ;;  %v225_v29 = vld [vmem:[%s399_s0 + $0x3] sm:$0x1]   ;;  %s288_s10 = smov 8  }
   0xf   :  { %v226_v30 = vld [vmem:[%s399_s0 + $0x2] sm:$0x1]   ;;  %v227_v31 = vld [vmem:[%s399_s0 + $0x1] sm:$0x1]   ;;  %s289_s0 = smov 4   ;;  %vm27_vm4 = vcmask 950144  }
  0x10   :  { %vm33_vm5 = vcmask 917344   ;;  %vm39_vm6 = vcmask 884544   ;;  %vm45_vm7 = vcmask 851744   ;;  %vm51_vm8 = vcmask 818944  }
  0x11   :  { %vm57_vm9 = vcmask 786144   ;;  %vm63_vm10 = vcmask 753344   ;;  %vm69_vm11 = vcmask 720544   ;;  %vm75_vm12 = vcmask 687744  }
  0x12   :  { %55 = vrot.lane.b32.xlu0 %v205_v8, %s267_s7  ;;  %61 = vrot.lane.b32.xlu1 %v206_v9, %s268_s8  ;;  %s277_s8 = smov 52   ;;  %vm81_vm13 = vcmask 654944   ;;  %vm87_vm14 = vcmask 622144   ;;  %vm93_vm15 = vcmask 589344   ;;  %vm99_vm0 = vcmask 556544  }
  0x16   :  { %67 = vrot.lane.b32.xlu0 %v207_v11, %s269_s13  ;;  %73 = vrot.lane.b32.xlu1 %v208_v12, %s270_s14  ;;  %s279_s14 = smov 44  }
  0x1a   :  { %79 = vrot.lane.b32.xlu0 %v209_v13, %s271_s19  ;;  %85 = vrot.lane.b32.xlu1 %v210_v14, %s272_s20  ;;  %s281_s20 = smov 36  }
  0x1e   :  { %91 = vrot.lane.b32.xlu0 %v211_v15, %s273_s25  ;;  %97 = vrot.lane.b32.xlu1 %v212_v16, %s274_s26  ;;  %s283_s26 = smov 28  }
  0x22   :  { %103 = vrot.lane.b32.xlu0 %v213_v17, %s275_s2  ;;  %109 = vrot.lane.b32.xlu1 %v214_v18, %s276_s3  ;;  %s285_s3 = smov 20  }
  0x26   :  { %115 = vrot.lane.b32.xlu0 %v215_v19, %s277_s8  ;;  %121 = vrot.lane.b32.xlu1 %v216_v20, %s278_s9  ;;  %s287_s9 = smov 12  }
  0x2a   :  { %127 = vrot.lane.b32.xlu0 %v217_v21, %s279_s14  ;;  %133 = vrot.lane.b32.xlu1 %v218_v22, %s280_s15 }
  0x2e   :  { %139 = vrot.lane.b32.xlu0 %v219_v23, %s281_s20  ;;  %145 = vrot.lane.b32.xlu1 %v220_v24, %s282_s21 }
  0x32   :  { %151 = vrot.lane.b32.xlu0 %v221_v25, %s283_s26  ;;  %157 = vrot.lane.b32.xlu1 %v222_v26, %s284_s27 }
  0x36   :  { %163 = vrot.lane.b32.xlu0 %v223_v27, %s285_s3  ;;  %169 = vrot.lane.b32.xlu1 %v224_v28, %s286_s4 }
  0x3a   :  { %175 = vrot.lane.b32.xlu0 %v225_v29, %s287_s9  ;;  %181 = vrot.lane.b32.xlu1 %v226_v30, %s288_s10 }
  0x3e   :  { %187 = vrot.lane.b32.xlu0 %v227_v31, %s289_s0 }
  0x74   :  { %v8_v32 = vpop.permute.xlu0 %7   ;;  %v20_v33 = vpop.permute.xlu1 %19  }
  0x75   :  { %10 = vst.msk [vmem:[#allocation0] sm:$0x1] %vm9_vm1, %v8_v32   ;;  %vm105_vm1 = vcmask 523744  }
  0x78   :  { %v14_v34 = vpop.permute.xlu0 %13   ;;  %v26_v35 = vpop.permute.xlu1 %25  }
  0x79   :  { %16 = vst.msk [vmem:[#allocation0] sm:$0x1] %vm15_vm2, %v14_v34   ;;  %vm111_vm2 = vcmask 490944  }
  0x7a   :  { %22 = vst.msk [vmem:[#allocation0] sm:$0x1] %vm21_vm3, %v20_v33   ;;  %vm117_vm3 = vcmask 458144  }
  0x7b   :  { %28 = vst.msk [vmem:[#allocation0] sm:$0x1] %vm27_vm4, %v26_v35   ;;  %vm123_vm4 = vcmask 425344  }
  0x7c   :  { %v32_v36 = vpop.permute.xlu0 %31   ;;  %v38_v37 = vpop.permute.xlu1 %37  }
  0x7d   :  { %34 = vst.msk [vmem:[#allocation0] sm:$0x1] %vm33_vm5, %v32_v36   ;;  %vm129_vm5 = vcmask 392544  }
  0x7e   :  { %40 = vst.msk [vmem:[#allocation0] sm:$0x1] %vm39_vm6, %v38_v37   ;;  %vm135_vm6 = vcmask 359744  }
  0x80   :  { %v44_v38 = vpop.permute.xlu0 %43   ;;  %v50_v39 = vpop.permute.xlu1 %49  }
  0x81   :  { %46 = vst.msk [vmem:[#allocation0] sm:$0x1] %vm45_vm7, %v44_v38   ;;  %vm141_vm7 = vcmask 326944  }
  0x82   :  { %52 = vst.msk [vmem:[#allocation0] sm:$0x1] %vm51_vm8, %v50_v39   ;;  %vm147_vm8 = vcmask 294144  }
  0x84   :  { %v56_v40 = vpop.permute.xlu0 %55   ;;  %v62_v41 = vpop.permute.xlu1 %61  }
  0x85   :  { %58 = vst.msk [vmem:[#allocation0] sm:$0x1] %vm57_vm9, %v56_v40   ;;  %vm153_vm9 = vcmask 261344  }
  0x86   :  { %64 = vst.msk [vmem:[#allocation0] sm:$0x1] %vm63_vm10, %v62_v41   ;;  %vm159_vm10 = vcmask 228544  }
  0x88   :  { %v68_v42 = vpop.permute.xlu0 %67   ;;  %v74_v43 = vpop.permute.xlu1 %73  }
  0x89   :  { %70 = vst.msk [vmem:[#allocation0] sm:$0x1] %vm69_vm11, %v68_v42   ;;  %vm165_vm11 = vcmask 195744  }
  0x8a   :  { %76 = vst.msk [vmem:[#allocation0] sm:$0x1] %vm75_vm12, %v74_v43   ;;  %vm171_vm12 = vcmask 162944  }
  0x8c   :  { %v80_v44 = vpop.permute.xlu0 %79   ;;  %v86_v45 = vpop.permute.xlu1 %85  }
  0x8d   :  { %82 = vst.msk [vmem:[#allocation0] sm:$0x1] %vm81_vm13, %v80_v44   ;;  %vm177_vm13 = vcmask 130144  }
  0x8e   :  { %88 = vst.msk [vmem:[#allocation0] sm:$0x1] %vm87_vm14, %v86_v45   ;;  %vm183_vm14 = vcmask 97344  }
  0x90   :  { %v92_v46 = vpop.permute.xlu0 %91   ;;  %v98_v47 = vpop.permute.xlu1 %97  }
  0x91   :  { %94 = vst.msk [vmem:[#allocation0] sm:$0x1] %vm93_vm15, %v92_v46   ;;  %vm189_vm15 = vcmask 64544  }
  0x92   :  { %100 = vst.msk [vmem:[#allocation0] sm:$0x1] %vm99_vm0, %v98_v47  }
  0x94   :  { %v104_v48 = vpop.permute.xlu0 %103   ;;  %v110_v49 = vpop.permute.xlu1 %109  }
  0x95   :  { %106 = vst.msk [vmem:[#allocation0] sm:$0x1] %vm105_vm1, %v104_v48  }
  0x96   :  { %112 = vst.msk [vmem:[#allocation0] sm:$0x1] %vm111_vm2, %v110_v49  }
  0x98   :  { %v116_v50 = vpop.permute.xlu0 %115   ;;  %v122_v51 = vpop.permute.xlu1 %121  }
  0x99   :  { %118 = vst.msk [vmem:[#allocation0] sm:$0x1] %vm117_vm3, %v116_v50  }
  0x9a   :  { %124 = vst.msk [vmem:[#allocation0] sm:$0x1] %vm123_vm4, %v122_v51  }
  0x9c   :  { %v128_v52 = vpop.permute.xlu0 %127   ;;  %v134_v53 = vpop.permute.xlu1 %133  }
  0x9d   :  { %130 = vst.msk [vmem:[#allocation0] sm:$0x1] %vm129_vm5, %v128_v52  }
  0x9e   :  { %136 = vst.msk [vmem:[#allocation0] sm:$0x1] %vm135_vm6, %v134_v53  }
  0xa0   :  { %v140_v54 = vpop.permute.xlu0 %139   ;;  %v146_v55 = vpop.permute.xlu1 %145  }
  0xa1   :  { %142 = vst.msk [vmem:[#allocation0] sm:$0x1] %vm141_vm7, %v140_v54  }
  0xa2   :  { %148 = vst.msk [vmem:[#allocation0] sm:$0x1] %vm147_vm8, %v146_v55  }
  0xa4   :  { %v152_v56 = vpop.permute.xlu0 %151   ;;  %v158_v57 = vpop.permute.xlu1 %157  }
  0xa5   :  { %154 = vst.msk [vmem:[#allocation0] sm:$0x1] %vm153_vm9, %v152_v56  }
  0xa6   :  { %160 = vst.msk [vmem:[#allocation0] sm:$0x1] %vm159_vm10, %v158_v57  }
  0xa8   :  { %v164_v58 = vpop.permute.xlu0 %163   ;;  %v170_v59 = vpop.permute.xlu1 %169  }
  0xa9   :  { %166 = vst.msk [vmem:[#allocation0] sm:$0x1] %vm165_vm11, %v164_v58  }
  0xaa   :  { %172 = vst.msk [vmem:[#allocation0] sm:$0x1] %vm171_vm12, %v170_v59  }
  0xac   :  { %v176_v60 = vpop.permute.xlu0 %175   ;;  %v182_v61 = vpop.permute.xlu1 %181  }
  0xad   :  { %178 = vst.msk [vmem:[#allocation0] sm:$0x1] %vm177_vm13, %v176_v60  }
  0xae   :  { %184 = vst.msk [vmem:[#allocation0] sm:$0x1] %vm183_vm14, %v182_v61  }
  0xb0   :  { %v188_v62 = vpop.permute.xlu0 %187  }
  0xb1   :  { %190 = vst.msk [vmem:[#allocation0] sm:$0x1] %vm189_vm15, %v188_v62  }
  0xb8   :  { %v194_v63 = vld [vmem:[#allocation0] sm:$0x1] }
  0xb9   :  { %196 = vst [vmem:[%s400_s1] sm:$0x1] %v194_v63 }

// kernel: ff_forward.1
= control target key start
LH: loop header
LB: loop body
LE: loop exit
PB: predicated region body
PF: predicated region fallthrough
CT: control target
= control target key end

     0   :  { %s4532_s24 = smov 0   ;;  %s5715_s0 = inlined_call_operand.vmem [shape: f32[63,128], index: 0, kind: input, shape index: {}]   ;;  %s5716_s1 = inlined_call_operand.vmem [shape: f32[128,128], index: 1, kind: input, shape index: {}]   ;;  %s5717_s2 = inlined_call_operand.vmem [shape: f32[1,128], index: 2, kind: input, shape index: {}]   ;;  %s5718_s3 = inlined_call_operand.vmem [shape: f32[128,128], index: 3, kind: input, shape index: {}]   ;;  %s5719_s4 = inlined_call_operand.vmem [shape: f32[1,128], index: 4, kind: input, shape index: {}]   ;;  %s5720_s5 = inlined_call_operand.vmem [shape: f32[128,32], index: 5, kind: input, shape index: {}]   ;;  %s5721_s6 = inlined_call_operand.vmem [shape: f32[1,32], index: 6, kind: input, shape index: {}]   ;;  %s5722_s7 = inlined_call_operand.vmem [shape: f32[63,32], index: 7, kind: output, shape index: {}]  }
   0x1 LB: > { %s2746_s25 = sadd.s32 4294967295, %s4490_s24   ;;  %p2750_p0 = scmp.ge.s32.totalorder %s4490_s24, 1  ;;  %s4490_s24 = sphi %s4532_s24, %s17_s24  }
   0x2   : > { %p238_p1 = scmp.lt.s32.totalorder %s4490_s24, 3 }
   0x4   : > { %p239_p2 = pnand %p2750_p0, %p238_p1 }
   0x5   : > { %v286_v0 = vld [vmem:[%s5716_s1] sm:$0xff] (!%p239_p2)  ;;  %v287_v1 = vld [vmem:[%s5716_s1 + $0x8] sm:$0xff] (!%p239_p2)  ;;  %v4549_v2 = vld [vmem:[%s5716_s1 + $0x10] sm:$0xff] (!%p239_p2)  ;;  %s2751_s9 = sshll.u32 (!%p239_p2), %s2746_s25, 2  ;;  %vm2685_vm0 = vcmask (!%p239_p2), 261120  }
   0x6   : > { %242 = sbr.rel (%p239_p2) target bundleno = 1137 (0x471), region = 48  ;;  %v310_v3 = vand.u32 (!%p239_p2), 4294901760, %v286_v0  ;;  %v313_v4 = vand.u32 (!%p239_p2), 4294901760, %v287_v1  ;;  %v4554_v5 = vld [vmem:[%s5716_s1 + $0x18] sm:$0xff] (!%p239_p2)  ;;  %v316_v6 = vand.u32 (!%p239_p2), 4294901760, %v4549_v2  ;;  %v4560_v7 = vld [vmem:[%s5716_s1 + $0x20] sm:$0xff] (!%p239_p2) }
   0x7   : > { %v4565_v8 = vld [vmem:[%s5716_s1 + $0x28] sm:$0xff] (!%p239_p2)  ;;  %v319_v9 = vand.u32 (!%p239_p2), 4294901760, %v4554_v5  ;;  %v322_v11 = vand.u32 (!%p239_p2), 4294901760, %v4560_v7  ;;  %v4579_v14 = vld [vmem:[%s5716_s1 + $0x30] sm:$0xff] (!%p239_p2)  ;;  %v4584_v15 = vld [vmem:[%s5716_s1 + $0x38] sm:$0xff] (!%p239_p2)  ;;  %p271_p3 = scmp.lt.s32.totalorder (!%p239_p2), %s2751_s9, 7 }
   0x8   : > { %v4568_v10 = vpack.c.bf16 (!%p239_p2), %v313_v4, %v310_v3  ;;  %v325_v12 = vand.u32 (!%p239_p2), 4294901760, %v4565_v8  ;;  %v328_v17 = vand.u32 (!%p239_p2), 4294901760, %v4579_v14  ;;  %v331_v18 = vand.u32 (!%p239_p2), 4294901760, %v4584_v15  ;;  %v4605_v19 = vld [vmem:[%s5716_s1 + $0x40] sm:$0xff] (!%p239_p2)  ;;  %v4610_v20 = vld [vmem:[%s5716_s1 + $0x48] sm:$0xff] (!%p239_p2)  ;;  %v4636_v25 = vld [vmem:[%s5716_s1 + $0x50] sm:$0xff] (!%p239_p2) }
   0x9   : > { %v4574_v13 = vpack.c.bf16 (!%p239_p2), %v319_v9, %v316_v6  ;;  %v334_v23 = vand.u32 (!%p239_p2), 4294901760, %v4605_v19  ;;  %v337_v24 = vand.u32 (!%p239_p2), 4294901760, %v4610_v20  ;;  %v4643_v27 = vld [vmem:[%s5716_s1 + $0x58] sm:$0xff] (!%p239_p2)  ;;  %v340_v29 = vand.u32 (!%p239_p2), 4294901760, %v4636_v25  ;;  %v4666_v34 = vld [vmem:[%s5716_s1 + $0x60] sm:$0xff] (!%p239_p2)  ;;  %v4671_v35 = vld [vmem:[%s5716_s1 + $0x68] sm:$0xff] (!%p239_p2) }
   0xa   : > { %3805 = vmatprep.subr.bf16.mxu1 (!%p239_p2), %v4568_v10  ;;  %3901 = vmatprep.subr.bf16.mxu0 (!%p239_p2), %v4568_v10  ;;  %v4598_v16 = vpack.c.bf16 (!%p239_p2), %v325_v12, %v322_v11  ;;  %v4629_v22 = vpack.c.bf16 (!%p239_p2), %v331_v18, %v328_v17  ;;  %v4651_v30 = vsub.f32 (!%p239_p2), %v286_v0, %v310_v3  ;;  %v343_v33 = vand.u32 (!%p239_p2), 4294901760, %v4643_v27  ;;  %v4686_v42 = vld [vmem:[%s5716_s1 + $0x70] sm:$0xff] (!%p239_p2)  ;;  %v4703_v46 = vld [vmem:[%s5716_s1 + $0x78] sm:$0xff] (!%p239_p2) }
   0xb   : > { %3807 = vmatpush3.bf16.msra.mxu1 (!%p239_p2), %v4568_v10  ;;  %3903 = vmatpush3.bf16.msra.mxu0 (!%p239_p2), %v4568_v10  ;;  %v4660_v32 = vpack.c.bf16 (!%p239_p2), %v337_v24, %v334_v23  ;;  %v4674_v37 = vsub.f32 (!%p239_p2), %v287_v1, %v313_v4  ;;  %v346_v40 = vand.u32 (!%p239_p2), 4294901760, %v4666_v34  ;;  %v5725_v41 = vand.u32 (!%p239_p2), 4294901760, %v4671_v35 }
   0xc   : > { %3809 = vmatprep.subr.bf16.mxu1 (!%p239_p2), %v4574_v13  ;;  %3905 = vmatprep.subr.bf16.mxu0 (!%p239_p2), %v4574_v13  ;;  %v433_v43 = vand.u32 (!%p239_p2), 4294901760, %v4651_v30  ;;  %v4690_v44 = vsub.f32 (!%p239_p2), %v4549_v2, %v316_v6  ;;  %v4698_v45 = vpack.c.bf16 (!%p239_p2), %v343_v33, %v340_v29  ;;  %v4709_v49 = vsub.f32 (!%p239_p2), %v4554_v5, %v319_v9 }
   0xd   : > { %s5782_s9 = smov (!%p271_p3, %s2751_s9), 7  ;;  %v440_v48 = vand.u32 4294901760, %v4674_v37  ;;  %v5724_v50 = vand.u32 4294901760, %v4686_v42  ;;  %v4722_v53 = vpack.c.bf16 %v5725_v41, %v346_v40  ;;  %v5723_v54 = vand.u32 4294901760, %v4703_v46 }
   0xe   : > { %s2752_s25 = sshll.u32 %s5782_s9, 3  ;;  %v434_v55 = vsub.f32 %v4651_v30, %v433_v43  ;;  %v447_v56 = vand.u32 4294901760, %v4690_v44  ;;  %v454_v58 = vand.u32 4294901760, %v4709_v49  ;;  %v4734_v59 = vsub.f32 %v4560_v7, %v322_v11 }
   0xf   : > { %s4618_s28 = scalar_lea.vmem %s5715_s0, %s2752_s25  ;;  %3811 = vmatpush3.bf16.msra.mxu1 %v4574_v13  ;;  %3907 = vmatpush3.bf16.msra.mxu0 %v4574_v13  ;;  %v441_v57 = vsub.f32 %v4674_v37, %v440_v48  ;;  %v4739_v60 = vsub.f32 %v4565_v8, %v325_v12  ;;  %v4747_v63 = vsub.f32 %v4579_v14, %v328_v17  ;;  %s280_s11 = scalar_lea.vmem %s5722_s7, %s2752_s25 }
  0x10   : > { %v282_v21 = vld [vmem:[%s4618_s28] sm:$0xff]  ;;  %3813 = vmatprep.subr.bf16.mxu1 %v4598_v16  ;;  %3909 = vmatprep.subr.bf16.mxu0 %v4598_v16  ;;  %v283_v31 = vld [vmem:[%s4618_s28 + $0x8] sm:$0xff]  ;;  %v284_v52 = vld [vmem:[%s4618_s28 + $0x10] sm:$0xff]  ;;  %v4752_v0 = vsub.f32 %v4584_v15, %v331_v18  ;;  %v4761_v2 = vpack.c.bf16 %v5723_v54, %v5724_v50  ;;  %v435_v3 = vand.u32 4294901760, %v434_v55  ;;  %v448_v4 = vsub.f32 %v4690_v44, %v447_v56 }
  0x11   : > { %v4638_v26 = vand.u32 4294901760, %v282_v21  ;;  %v4677_v39 = vand.u32 4294901760, %v283_v31  ;;  %v4741_v61 = vand.u32 4294901760, %v284_v52  ;;  %v285_v1 = vld [vmem:[%s4618_s28 + $0x18] sm:$0xff]  ;;  %v442_v6 = vand.u32 4294901760, %v441_v57 }
  0x12   : > { %v455_v7 = vsub.f32 %v4709_v49, %v454_v58  ;;  %v461_v8 = vand.u32 4294901760, %v4734_v59  ;;  %v468_v9 = vand.u32 4294901760, %v4739_v60  ;;  %v4773_v12 = vand.u32 4294901760, %v285_v1 }
  0x13   : > { %v4646_v28 = vsub.f32 %v282_v21, %v4638_v26  ;;  %3815 = vmatpush3.bf16.msra.mxu1 %v4598_v16  ;;  %3911 = vmatpush3.bf16.msra.mxu0 %v4598_v16  ;;  %v4713_v51 = vsub.f32 %v283_v31, %v4677_v39  ;;  %v4765_v5 = vsub.f32 %v284_v52, %v4741_v61  ;;  %v475_v17 = vand.u32 4294901760, %v4747_v63 }
  0x14   : > { %3817 = vmatprep.subr.bf16.mxu1 %v4629_v22  ;;  %3913 = vmatprep.subr.bf16.mxu0 %v4629_v22  ;;  %v3932_v14 = vpack.c.bf16 %v440_v48, %v433_v43  ;;  %v482_v18 = vand.u32 4294901760, %v4752_v0  ;;  %v449_v21 = vand.u32 4294901760, %v448_v4  ;;  %v4783_v31 = vsub.f32 %v4605_v19, %v334_v23 }
  0x15   : > { %v392_v36 = vand.u32 4294901760, %v4646_v28  ;;  %v402_v62 = vand.u32 4294901760, %v4713_v51  ;;  %v412_v11 = vand.u32 4294901760, %v4765_v5  ;;  %v3836_v43 = vpack.c.bf16 %v442_v6, %v435_v3 }
  0x16   : > { %v462_v48 = vsub.f32 %v4734_v59, %v461_v8  ;;  %v469_v52 = vsub.f32 %v4739_v60, %v468_v9  ;;  %v483_v57 = vsub.f32 %v4752_v0, %v482_v18  ;;  %v4808_v4 = vsub.f32 %v4636_v25, %v340_v29 }
  0x17   : > { %v393_v38 = vsub.f32 %v4646_v28, %v392_v36  ;;  %3266 = vmatprep.mubr.f32.mxu0 %v392_v36  ;;  %3819 = vmatpush3.bf16.msra.mxu1 %v4629_v22  ;;  %v403_v15 = vsub.f32 %v4713_v51, %v402_v62  ;;  %v4788_v36 = vsub.f32 %v4610_v20, %v337_v24 }
  0x18   : > { %3915 = vmatpush3.bf16.msra.mxu0 %v4629_v22  ;;  %3821 = vmatprep.subr.bf16.mxu1 %v4660_v32  ;;  %v413_v19 = vsub.f32 %v4765_v5, %v412_v11  ;;  %v3936_v20 = vpack.c.bf16 %v454_v58, %v447_v56  ;;  %v476_v24 = vsub.f32 %v4747_v63, %v475_v17  ;;  %v463_v58 = vand.u32 4294901760, %v462_v48 }
  0x19   : > { %3917 = vmatprep.subr.bf16.mxu0 %v4660_v32  ;;  %v394_v47 = vand.u32 4294901760, %v393_v38  ;;  %v4791_v38 = vsub.f32 %v285_v1, %v4773_v12  ;;  %v404_v55 = vand.u32 4294901760, %v403_v15  ;;  %v489_v1 = vand.u32 4294901760, %v4783_v31 }
  0x1a   : > { %v496_v3 = vand.u32 4294901760, %v4788_v36  ;;  %v4814_v15 = vsub.f32 %v4643_v27, %v343_v33  ;;  %v414_v54 = vand.u32 4294901760, %v413_v19  ;;  %v477_v50 = vand.u32 4294901760, %v476_v24 }
  0x1b   : > { %3152 = vmatprep.mubr.f32.mxu1 %v394_v47  ;;  %3823 = vmatpush3.bf16.msra.mxu1 %v4660_v32  ;;  %v456_v47 = vand.u32 4294901760, %v455_v7  ;;  %v422_v23 = vand.u32 4294901760, %v4791_v38  ;;  %v470_v7 = vand.u32 4294901760, %v469_v52  ;;  %v484_v41 = vand.u32 4294901760, %v483_v57 }
  0x1c   : > { %3919 = vmatpush3.bf16.msra.mxu0 %v4660_v32  ;;  %3825 = vmatprep.subr.bf16.mxu1 %v4698_v45  ;;  %v4819_v25 = vsub.f32 %v4666_v34, %v346_v40  ;;  %v503_v27 = vand.u32 4294901760, %v4808_v4  ;;  %v5752_v33 = vand.u32 4294901760, %v4671_v35  ;;  %v3940_v52 = vpack.c.bf16 %v468_v9, %v461_v8 }
  0x1d   : > { %3921 = vmatprep.subr.bf16.mxu0 %v4698_v45  ;;  %v423_v6 = vsub.f32 %v4791_v38, %v422_v23  ;;  %v3840_v56 = vpack.c.bf16 %v456_v47, %v449_v21  ;;  %v490_v21 = vsub.f32 %v4783_v31, %v489_v1  ;;  %v497_v47 = vsub.f32 %v4788_v36, %v496_v3 }
  0x1e   : > { %v3844_v48 = vpack.c.bf16 %v470_v7, %v463_v58  ;;  %v510_v34 = vand.u32 4294901760, %v4814_v15  ;;  %v3848_v40 = vpack.c.bf16 %v484_v41, %v477_v50  ;;  %v5754_v50 = vand.u32 4294901760, %v4703_v46 }
  0x1f   : > { %3827 = vmatpush3.bf16.msra.mxu1 %v4698_v45  ;;  %v424_v29 = vand.u32 4294901760, %v423_v6  ;;  %v491_v19 = vand.u32 4294901760, %v490_v21 }
  0x20   : > { %3923 = vmatpush3.bf16.msra.mxu0 %v4698_v45  ;;  %3829 = vmatprep.subr.bf16.mxu1 %v4722_v53  ;;  %v511_v8 = vsub.f32 %v4814_v15, %v510_v34  ;;  %v4842_v9 = vsub.f32 %v4703_v46, %v5754_v50  ;;  %v3952_v6 = vpack.c.bf16 %v510_v34, %v503_v27 }
  0x21   : > { %3925 = vmatprep.subr.bf16.mxu0 %v4722_v53  ;;  %v3872_v34 = vpack.c.bf16 %v4709_v49, %v4690_v44  ;;  %v4904_v49 = vld [vmem:[%s5718_s3 + $0x10] sm:$0xff] }
  0x22   : > { %v538_v46 = vand.u32 4294901760, %v4842_v9 }
  0x23   : > { %3831 = vmatpush3.bf16.msra.mxu1 %v4722_v53 }
  0x24   : > { %3927 = vmatpush3.bf16.msra.mxu0 %v4722_v53  ;;  %3833 = vmatprep.subr.bf16.mxu1 %v4761_v2  ;;  %v539_v7 = vsub.f32 %v4842_v9, %v538_v46 }
  0x25   : > { %3929 = vmatprep.subr.bf16.mxu0 %v4761_v2 }
  0x27   : > { %3835 = vmatpush3.bf16.msra.mxu1 %v4761_v2 }
  0x28   : > { %3931 = vmatpush3.bf16.msra.mxu0 %v4761_v2  ;;  %3837 = vmatprep.subr.bf16.mxu1 %v3836_v43 }
  0x29   : > { %3933 = vmatprep.subr.bf16.mxu0 %v3932_v14 }
  0x2a   : > { %3153 = vmatmul.mubr.f32.vlgmr.msra.gmra.mrb[0].mxu1 %v404_v55  ;;  %v498_v55 = vand.u32 4294901760, %v497_v47 }
  0x2b   : > { %3267 = vmatmul.mubr.f32.vlgmr.msra.gmra.mrb[0].mxu0 %v402_v62  ;;  %3839 = vmatpush3.bf16.msra.mxu1 %v3836_v43  ;;  %v4827_v62 = vsub.f32 %v4671_v35, %v5752_v33  ;;  %v517_v43 = vand.u32 4294901760, %v4819_v25  ;;  %v504_v35 = vsub.f32 %v4808_v4, %v503_v27  ;;  %v540_v33 = vand.u32 4294901760, %v539_v7 }
  0x2c   : > { %3935 = vmatpush3.bf16.msra.mxu0 %v3932_v14  ;;  %3841 = vmatprep.subr.bf16.mxu1 %v3840_v56  ;;  %v3944_v14 = vpack.c.bf16 %v482_v18, %v475_v17  ;;  %v3852_v17 = vpack.c.bf16 %v498_v55, %v491_v19 }
  0x2d   : > { %3937 = vmatprep.subr.bf16.mxu0 %v3936_v20  ;;  %3155 = vmatprep.mubr.f32.mxu1 %v414_v54  ;;  %v524_v24 = vand.u32 4294901760, %v4827_v62  ;;  %v5753_v54 = vand.u32 4294901760, %v4686_v42  ;;  %v518_v18 = vsub.f32 %v4819_v25, %v517_v43 }
  0x2e   : > { %3269 = vmatprep.mubr.f32.mxu0 %v412_v11  ;;  %3156 = vmatmul.mubr.f32.gmra.mrb[2].mxu1 %v424_v29  ;;  %v3948_v11 = vpack.c.bf16 %v496_v3, %v489_v1 }
  0x2f   : > { %3270 = vmatmul.mubr.f32.gmra.mrb[2].mxu0 %v422_v23  ;;  %3843 = vmatpush3.bf16.msra.mxu1 %v3840_v56  ;;  %v4837_v41 = vsub.f32 %v4686_v42, %v5753_v54  ;;  %v525_v23 = vsub.f32 %v4827_v62, %v524_v24  ;;  %v505_v42 = vand.u32 4294901760, %v504_v35  ;;  %v519_v56 = vand.u32 4294901760, %v518_v18  ;;  %v1098_v18 = vld [vmem:[%s5718_s3 + $0x78] sm:$0xff] }
  0x30   : > { %3939 = vmatpush3.bf16.msra.mxu0 %v3936_v20  ;;  %3845 = vmatprep.subr.bf16.mxu1 %v3844_v48  ;;  %v512_v20 = vand.u32 4294901760, %v511_v8  ;;  %v3956_v21 = vpack.c.bf16 %v524_v24, %v517_v43  ;;  %v1094_v43 = vld [vmem:[%s5718_s3 + $0x58] sm:$0xff]  ;;  %v1095_v24 = vld [vmem:[%s5718_s3 + $0x60] sm:$0xff]  ;;  %v1096_v8 = vld [vmem:[%s5718_s3 + $0x68] sm:$0xff] }
  0x31   : > { %3941 = vmatprep.subr.bf16.mxu0 %v3940_v52  ;;  %3190 = vmatprep.mubr.f32.mxu1 %v4638_v26  ;;  %v531_v57 = vand.u32 4294901760, %v4837_v41  ;;  %v526_v3 = vand.u32 4294901760, %v525_v23  ;;  %v1140_v55 = vand.u32 4294901760, %v1094_v43  ;;  %v1143_v54 = vand.u32 4294901760, %v1095_v24 }
  0x32   : > { %3304 = vmatprep.mubr.f32.mxu0 %v4638_v26  ;;  %v3856_v1 = vpack.c.bf16 %v512_v20, %v505_v42  ;;  %v1152_v42 = vand.u32 4294901760, %v1098_v18 }
  0x33   : > { %3847 = vmatpush3.bf16.msra.mxu1 %v3844_v48  ;;  %v532_v58 = vsub.f32 %v4837_v41, %v531_v57  ;;  %v3860_v29 = vpack.c.bf16 %v526_v3, %v519_v56  ;;  %v3960_v48 = vpack.c.bf16 %v538_v46, %v531_v57 }
  0x34   : > { %3943 = vmatpush3.bf16.msra.mxu0 %v3940_v52  ;;  %3849 = vmatprep.subr.bf16.mxu1 %v3848_v40  ;;  %v3868_v52 = vpack.c.bf16 %v4674_v37, %v4651_v30  ;;  %v3876_v30 = vpack.c.bf16 %v4739_v60, %v4734_v59  ;;  %v3884_v37 = vpack.c.bf16 %v4788_v36, %v4783_v31  ;;  %v4909_v59 = vld [vmem:[%s5718_s3 + $0x18] sm:$0xff]  ;;  %v1113_v60 = vand.u32 4294901760, %v4904_v49 }
  0x35   : > { %3945 = vmatprep.subr.bf16.mxu0 %v3944_v14  ;;  %v533_v47 = vand.u32 4294901760, %v532_v58 }
  0x37   : > { %3851 = vmatpush3.bf16.msra.mxu1 %v3848_v40  ;;  %v3864_v27 = vpack.c.bf16 %v540_v33, %v533_v47 }
  0x38   : > { %3947 = vmatpush3.bf16.msra.mxu0 %v3944_v14  ;;  %3853 = vmatprep.subr.bf16.mxu1 %v3852_v17  ;;  %v1093_v14 = vld [vmem:[%s5718_s3 + $0x50] sm:$0xff] }
  0x39   : > { %3949 = vmatprep.subr.bf16.mxu0 %v3948_v11  ;;  %v1137_v19 = vand.u32 4294901760, %v1093_v14 }
  0x3b   : > { %3855 = vmatpush3.bf16.msra.mxu1 %v3852_v17  ;;  %v4970_v35 = vpack.c.bf16 %v1140_v55, %v1137_v19  ;;  %v1097_v17 = vld [vmem:[%s5718_s3 + $0x70] sm:$0xff] }
  0x3c   : > { %3951 = vmatpush3.bf16.msra.mxu0 %v3948_v11  ;;  %3857 = vmatprep.subr.bf16.mxu1 %v3856_v1  ;;  %v1149_v23 = vand.u32 4294901760, %v1097_v17 }
  0x3d   : > { %3953 = vmatprep.subr.bf16.mxu0 %v3952_v6 }
  0x3e   : > { %v4998_v46 = vpack.c.bf16 %v1152_v42, %v1149_v23 }
  0x3f   : > { %3859 = vmatpush3.bf16.msra.mxu1 %v3856_v1 }
  0x40   : > { %3955 = vmatpush3.bf16.msra.mxu0 %v3952_v6  ;;  %3861 = vmatprep.subr.bf16.mxu1 %v3860_v29 }
  0x41   : > { %3957 = vmatprep.subr.bf16.mxu0 %v3956_v21 }
  0x43   : > { %3863 = vmatpush3.bf16.msra.mxu1 %v3860_v29 }
  0x44   : > { %3959 = vmatpush3.bf16.msra.mxu0 %v3956_v21  ;;  %3865 = vmatprep.subr.bf16.mxu1 %v3864_v27 }
  0x45   : > { %3961 = vmatprep.subr.bf16.mxu0 %v3960_v48 }
  0x47   : > { %3867 = vmatpush3.bf16.msra.mxu1 %v3864_v27 }
  0x48   : > { %3963 = vmatpush3.bf16.msra.mxu0 %v3960_v48  ;;  %3869 = vmatprep.subr.bf16.mxu1 %v3868_v52 }
  0x49   : > { %3965 = vmatprep.subr.bf16.mxu0 %v4568_v10 }
  0x4a   : > { %3191 = vmatmul.mubr.f32.vlgmr.msra.gmra.mrb[0].mxu1 %v4677_v39 }
  0x4b   : > { %3305 = vmatmul.mubr.f32.vlgmr.msra.gmra.mrb[0].mxu0 %v4677_v39  ;;  %3871 = vmatpush3.bf16.msra.mxu1 %v3868_v52 }
  0x4c   : > { %3967 = vmatpush3.bf16.msra.mxu0 %v4568_v10  ;;  %3873 = vmatprep.subr.bf16.mxu1 %v3872_v34  ;;  %v3880_v10 = vpack.c.bf16 %v4752_v0, %v4747_v63  ;;  %v1116_v63 = vand.u32 4294901760, %v4909_v59 }
  0x4d   : > { %3969 = vmatprep.subr.bf16.mxu0 %v4574_v13  ;;  %3193 = vmatprep.mubr.f32.mxu1 %v4741_v61 }
  0x4e   : > { %3307 = vmatprep.mubr.f32.mxu0 %v4741_v61  ;;  %3194 = vmatmul.mubr.f32.gmra.mrb[2].mxu1 %v4773_v12  ;;  %v4923_v0 = vpack.c.bf16 %v1116_v63, %v1113_v60 }
  0x4f   : > { %3308 = vmatmul.mubr.f32.gmra.mrb[2].mxu0 %v4773_v12  ;;  %3875 = vmatpush3.bf16.msra.mxu1 %v3872_v34 }
  0x50   : > { %3971 = vmatpush3.bf16.msra.mxu0 %v4574_v13  ;;  %3877 = vmatprep.subr.bf16.mxu1 %v3876_v30  ;;  %v3888_v13 = vpack.c.bf16 %v4814_v15, %v4808_v4  ;;  %v1091_v4 = vld [vmem:[%s5718_s3 + $0x40] sm:$0xff]  ;;  %v1092_v15 = vld [vmem:[%s5718_s3 + $0x48] sm:$0xff] }
  0x51   : > { %3973 = vmatprep.subr.bf16.mxu0 %v4598_v16  ;;  %3228 = vmatprep.mubr.f32.mxu1 %v4646_v28  ;;  %v3896_v28 = vpack.c.bf16 %v4842_v9, %v4837_v41  ;;  %v1146_v41 = vand.u32 4294901760, %v1096_v8 }
  0x52   : > { %3342 = vmatprep.mubr.f32.mxu0 %v4638_v26  ;;  %v4888_v26 = vld [vmem:[%s5718_s3] sm:$0xff] }
  0x53   : > { %3879 = vmatpush3.bf16.msra.mxu1 %v3876_v30  ;;  %v4980_v50 = vpack.c.bf16 %v1146_v41, %v1143_v54 }
  0x54   : > { %3975 = vmatpush3.bf16.msra.mxu0 %v4598_v16  ;;  %3881 = vmatprep.subr.bf16.mxu1 %v3880_v10  ;;  %v3892_v16 = vpack.c.bf16 %v4827_v62, %v4819_v25  ;;  %v1131_v25 = vand.u32 4294901760, %v1091_v4  ;;  %v1134_v62 = vand.u32 4294901760, %v1092_v15 }
  0x55   : > { %3977 = vmatprep.subr.bf16.mxu0 %v4629_v22 }
  0x56   : > { %v4960_v40 = vpack.c.bf16 %v1134_v62, %v1131_v25 }
  0x57   : > { %3883 = vmatpush3.bf16.msra.mxu1 %v3880_v10 }
  0x58   : > { %3979 = vmatpush3.bf16.msra.mxu0 %v4629_v22  ;;  %3885 = vmatprep.subr.bf16.mxu1 %v3884_v37  ;;  %v4893_v22 = vld [vmem:[%s5718_s3 + $0x8] sm:$0xff] }
  0x59   : > { %3981 = vmatprep.subr.bf16.mxu0 %v4660_v32  ;;  %v1110_v44 = vand.u32 4294901760, %v4893_v22 }
  0x5b   : > { %3887 = vmatpush3.bf16.msra.mxu1 %v3884_v37  ;;  %v4986_v11 = vsub.f32 %v4893_v22, %v1110_v44  ;;  %v5036_v22 = vsub.f32 %v1092_v15, %v1134_v62 }
  0x5c   : > { %3983 = vmatpush3.bf16.msra.mxu0 %v4660_v32  ;;  %3889 = vmatprep.subr.bf16.mxu1 %v3888_v13  ;;  %v1107_v32 = vand.u32 4294901760, %v4888_v26 }
  0x5d   : > { %3985 = vmatprep.subr.bf16.mxu0 %v4698_v45  ;;  %v1237_v57 = vand.u32 4294901760, %v4986_v11 }
  0x5e   : > { %v4983_v9 = vsub.f32 %v4888_v26, %v1107_v32  ;;  %v5034_v26 = vsub.f32 %v1091_v4, %v1131_v25 }
  0x5f   : > { %3891 = vmatpush3.bf16.msra.mxu1 %v3888_v13  ;;  %v1238_v56 = vsub.f32 %v4986_v11, %v1237_v57 }
  0x60   : > { %3987 = vmatpush3.bf16.msra.mxu0 %v4698_v45  ;;  %3893 = vmatprep.subr.bf16.mxu1 %v3892_v16  ;;  %v4913_v45 = vpack.c.bf16 %v1110_v44, %v1107_v32  ;;  %v1230_v20 = vand.u32 4294901760, %v4983_v9  ;;  %v5733_v44 = vand.u32 4294901760, %v5034_v26 }
  0x61   : > { %3989 = vmatprep.subr.bf16.mxu0 %v4722_v53  ;;  %v1239_v3 = vand.u32 4294901760, %v1238_v56 }
  0x62   : > { %v1231_v6 = vsub.f32 %v4983_v9, %v1230_v20 }
  0x63   : > { %3895 = vmatpush3.bf16.msra.mxu1 %v3892_v16 }
  0x64   : > { %3991 = vmatpush3.bf16.msra.mxu0 %v4722_v53  ;;  %3897 = vmatprep.subr.bf16.mxu1 %v3896_v28  ;;  %v1232_v1 = vand.u32 4294901760, %v1231_v6 }
  0x65   : > { %3993 = vmatprep.subr.bf16.mxu0 %v4761_v2 }
  0x66   : > { %v5008_v58 = vpack.c.bf16 %v1239_v3, %v1232_v1 }
  0x67   : > { %3899 = vmatpush3.bf16.msra.mxu1 %v3896_v28 }
  0x68   : > { %3995 = vmatpush3.bf16.msra.mxu0 %v4761_v2  ;;  %3997 = vmatprep.subr.bf16.mxu1 %v4913_v45 }
  0x6a   : > { %3229 = vmatmul.mubr.f32.vlgmr.msra.gmra.mrb[0].mxu1 %v4713_v51  ;;  %v1087_v51 = vld [vmem:[%s5718_s3 + $0x20] sm:$0xff] }
  0x6b   : > { %3343 = vmatmul.mubr.f32.vlgmr.msra.gmra.mrb[0].mxu0 %v4677_v39  ;;  %3231 = vmatprep.mubr.f32.mxu1 %v4765_v5  ;;  %v1088_v39 = vld [vmem:[%s5718_s3 + $0x28] sm:$0xff]  ;;  %v1119_v53 = vand.u32 4294901760, %v1087_v51  ;;  %v1089_v5 = vld [vmem:[%s5718_s3 + $0x30] sm:$0xff] }
  0x6c   : > { %3345 = vmatprep.mubr.f32.mxu0 %v4741_v61  ;;  %3999 = vmatpush3.bf16.msra.mxu1 %v4913_v45  ;;  %v1122_v61 = vand.u32 4294901760, %v1088_v39  ;;  %v1125_v31 = vand.u32 4294901760, %v1089_v5 }
  0x6d   : > { %4001 = vmatprep.subr.bf16.mxu1 %v4923_v0  ;;  %v5010_v7 = vsub.f32 %v1087_v51, %v1119_v53  ;;  %v5732_v51 = vand.u32 4294901760, %v5036_v22 }
  0x6e   : > { %3232 = vmatmul.mubr.f32.gmra.mrb[2].mxu1 %v4791_v38  ;;  %v4940_v2 = vpack.c.bf16 %v1122_v61, %v1119_v53  ;;  %v5012_v29 = vsub.f32 %v1088_v39, %v1122_v61  ;;  %v5023_v48 = vsub.f32 %v1089_v5, %v1125_v31  ;;  %v1287_v53 = vsub.f32 %v5034_v26, %v5733_v44 }
  0x6f   : > { %3346 = vmatmul.mubr.f32.gmra.mrb[2].mxu0 %v4773_v12  ;;  %v1090_v12 = vld [vmem:[%s5718_s3 + $0x38] sm:$0xff]  ;;  %v5737_v21 = vand.u32 4294901760, %v5010_v7  ;;  %v1294_v61 = vsub.f32 %v5036_v22, %v5732_v51  ;;  %v5049_v5 = vsub.f32 %v1093_v14, %v1137_v19  ;;  %v5067_v19 = vsub.f32 %v1096_v8, %v1146_v41 }
  0x70   : > { %4003 = vmatpush3.bf16.msra.mxu1 %v4923_v0  ;;  %v1128_v36 = vand.u32 4294901760, %v1090_v12  ;;  %v5736_v47 = vand.u32 4294901760, %v5012_v29  ;;  %v5735_v10 = vand.u32 4294901760, %v5023_v48 }
  0x71   : > { %4005 = vmatprep.subr.bf16.mxu1 %v4940_v2  ;;  %v1259_v33 = vsub.f32 %v5010_v7, %v5737_v21  ;;  %v1295_v4 = vand.u32 4294901760, %v1294_v61  ;;  %v5731_v15 = vand.u32 4294901760, %v5049_v5  ;;  %v5728_v3 = vand.u32 4294901760, %v5067_v19 }
  0x72   : > { %v4950_v38 = vpack.c.bf16 %v1128_v36, %v1125_v31  ;;  %v1266_v27 = vsub.f32 %v5012_v29, %v5736_v47  ;;  %v5025_v52 = vsub.f32 %v1090_v12, %v1128_v36  ;;  %v1273_v16 = vsub.f32 %v5023_v48, %v5735_v10 }
  0x73   : > { %v1260_v34 = vand.u32 4294901760, %v1259_v33  ;;  %v5051_v12 = vsub.f32 %v1094_v43, %v1140_v55  ;;  %v1288_v36 = vand.u32 4294901760, %v1287_v53  ;;  %v1301_v6 = vsub.f32 %v5049_v5, %v5731_v15 }
  0x74   : > { %4007 = vmatpush3.bf16.msra.mxu1 %v4940_v2  ;;  %v1267_v30 = vand.u32 4294901760, %v1266_v27  ;;  %v5734_v37 = vand.u32 4294901760, %v5025_v52  ;;  %v1274_v32 = vand.u32 4294901760, %v1273_v16  ;;  %v5065_v43 = vsub.f32 %v1095_v24, %v1143_v54 }
  0x75   : > { %4009 = vmatprep.subr.bf16.mxu1 %v4950_v38  ;;  %v5730_v25 = vand.u32 4294901760, %v5051_v12  ;;  %v5057_v62 = vpack.c.bf16 %v1295_v4, %v1288_v36  ;;  %v1302_v55 = vand.u32 4294901760, %v1301_v6  ;;  %v1322_v24 = vsub.f32 %v5067_v19, %v5728_v3 }
  0x76   : > { %v5029_v13 = vpack.c.bf16 %v1267_v30, %v1260_v34  ;;  %v1280_v28 = vsub.f32 %v5025_v52, %v5734_v37  ;;  %v5729_v1 = vand.u32 4294901760, %v5065_v43  ;;  %v5076_v34 = vsub.f32 %v1097_v17, %v1149_v23 }
  0x77   : > { %v1308_v14 = vsub.f32 %v5051_v12, %v5730_v25  ;;  %v5078_v30 = vsub.f32 %v1098_v18, %v1152_v42  ;;  %v1323_v16 = vand.u32 4294901760, %v1322_v24  ;;  %v5101_v53 = vpack.c.bf16 %v5012_v29, %v5010_v7 }
  0x78   : > { %4011 = vmatpush3.bf16.msra.mxu1 %v4950_v38  ;;  %v1281_v39 = vand.u32 4294901760, %v1280_v28  ;;  %v1315_v27 = vsub.f32 %v5065_v43, %v5729_v1  ;;  %v5727_v54 = vand.u32 4294901760, %v5076_v34  ;;  %v5105_v61 = vpack.c.bf16 %v5025_v52, %v5023_v48 }
  0x79   : > { %4013 = vmatprep.subr.bf16.mxu1 %v4960_v40  ;;  %v1309_v56 = vand.u32 4294901760, %v1308_v14  ;;  %v5726_v41 = vand.u32 4294901760, %v5078_v30  ;;  %v5109_v36 = vpack.c.bf16 %v5036_v22, %v5034_v26  ;;  %v5113_v4 = vpack.c.bf16 %v5051_v12, %v5049_v5 }
  0x7a   : > { %v5053_v31 = vpack.c.bf16 %v1281_v39, %v1274_v32  ;;  %v1316_v8 = vand.u32 4294901760, %v1315_v27  ;;  %v1329_v28 = vsub.f32 %v5076_v34, %v5727_v54  ;;  %v5097_v39 = vpack.c.bf16 %v4986_v11, %v4983_v9 }
  0x7b   : > { %v5071_v33 = vpack.c.bf16 %v1309_v56, %v1302_v55  ;;  %v1336_v17 = vsub.f32 %v5078_v30, %v5726_v41  ;;  %v5117_v6 = vpack.c.bf16 %v5067_v19, %v5065_v43  ;;  %v5121_v14 = vpack.c.bf16 %v5078_v30, %v5076_v34  ;;  %v2755_v55 = vld [vmem:[%s5717_s2] ss:$0 sm:$0xff] }
  0x7c   : > { %4015 = vmatpush3.bf16.msra.mxu1 %v4960_v40  ;;  %v5091_v18 = vpack.c.bf16 %v1323_v16, %v1316_v8  ;;  %v1330_v23 = vand.u32 4294901760, %v1329_v28  ;;  %v5756_v9 = vand.u32 4294901760, %v5010_v7  ;;  %v5757_v11 = vand.u32 4294901760, %v5012_v29 }
  0x7d   : > { %4017 = vmatprep.subr.bf16.mxu1 %v4970_v35  ;;  %v1337_v42 = vand.u32 4294901760, %v1336_v17  ;;  %v5761_v7 = vand.u32 4294901760, %v5036_v22  ;;  %v5767_v22 = vand.u32 4294901760, %v5078_v30 }
  0x7f   : > { %v5093_v32 = vpack.c.bf16 %v1337_v42, %v1330_v23 }
  0x80   : > { %4019 = vmatpush3.bf16.msra.mxu1 %v4970_v35 }
  0x81   : > { %4021 = vmatprep.subr.bf16.mxu1 %v4980_v50 }
  0x84   : > { %4023 = vmatpush3.bf16.msra.mxu1 %v4980_v50 }
  0x85   : > { %4025 = vmatprep.subr.bf16.mxu1 %v4998_v46 }
  0x88   : > { %4027 = vmatpush3.bf16.msra.mxu1 %v4998_v46 }
  0x89   : > { %4029 = vmatprep.subr.bf16.mxu1 %v5008_v58 }
 0x13d   : > { %v3230_v56 = vpop.f32.mrb[0].mxu1 }
 0x13e   : > { %v3344_v27 = vpop.f32.mrb[0].mxu0  ;;  %v4380_v24 = vadd.f32 %v3230_v56, %v2755_v55  ;;  %v699_v8 = vpop.f32.mrb[1].mxu1  ;;  %v5129_v56 = vsub.f32 %v4904_v49, %v1113_v60 }
 0x13f   : > { %v1057_v16 = vpop.f32.mrb[1].mxu0  ;;  %v4382_v28 = vadd.f32 %v2755_v55, %v699_v8 }
 0x140   : > { %v4381_v17 = vadd.f32 %v4380_v24, %v3344_v27  ;;  %v5134_v27 = vsub.f32 %v4909_v59, %v1116_v63  ;;  %v1244_v24 = vand.u32 4294901760, %v5129_v56 }
 0x141   : > { %v4383_v23 = vadd.f32 %v4382_v28, %v1057_v16  ;;  %v3233_v42 = vpop.f32.mrb[2].mxu1 }
 0x142   : > { %v3347_v41 = vpop.f32.mrb[2].mxu0  ;;  %4460 = vtanh.f32 %v4381_v17  ;;  %v4384_v54 = vadd.f32 %v3233_v42, %v2755_v55  ;;  %v713_v3 = vpop.f32.mrb[3].mxu1  ;;  %v5738_v8 = vand.u32 4294901760, %v5134_v27  ;;  %v1245_v49 = vsub.f32 %v5129_v56, %v1244_v24 }
 0x143   : > { %v1069_v1 = vpop.f32.mrb[3].mxu0  ;;  %4462 = vtanh.f32 %v4383_v23  ;;  %v4386_v25 = vadd.f32 %v2755_v55, %v713_v3 }
 0x144   : > { %v4385_v15 = vadd.f32 %v4384_v54, %v3347_v41  ;;  %v1252_v59 = vsub.f32 %v5134_v27, %v5738_v8  ;;  %v1246_v23 = vand.u32 4294901760, %v1245_v49 }
 0x145   : > { %v4387_v51 = vadd.f32 %v4386_v25, %v1069_v1 }
 0x146   : > { %4464 = vtanh.f32 %v4385_v15  ;;  %v1253_v42 = vand.u32 4294901760, %v1252_v59 }
 0x147   : > { %4466 = vtanh.f32 %v4387_v51 }
 0x148   : > { %v4032_v8 = vpack.c.bf16 %v1253_v42, %v1246_v23 }
 0x14c   : > { %v4461_v16 = vpop.eup %4460 }
 0x14d   : > { %v4463_v3 = vpop.eup %4462  ;;  %v5138_v54 = vand.u32 4294901760, %v4461_v16 }
 0x14e   : > { %v5140_v15 = vand.u32 4294901760, %v4463_v3 }
 0x14f   : > { %v5143_v51 = vsub.f32 %v4461_v16, %v5138_v54 }
 0x150   : > { %v4465_v60 = vpop.eup %4464  ;;  %v5152_v63 = vsub.f32 %v4463_v3, %v5140_v15 }
 0x151   : > { %v4467_v25 = vpop.eup %4466  ;;  %v5154_v1 = vand.u32 4294901760, %v4465_v60  ;;  %v1199_v41 = vand.u32 4294901760, %v5143_v51 }
 0x152   : > { %v5157_v55 = vand.u32 4294901760, %v4467_v25  ;;  %v1189_v28 = vand.u32 4294901760, %v5152_v63 }
 0x153   : > { %v1200_v17 = vsub.f32 %v5143_v51, %v1199_v41  ;;  %v5164_v16 = vsub.f32 %v4465_v60, %v5154_v1 }
 0x154   : > { %v1190_v3 = vsub.f32 %v5152_v63, %v1189_v28  ;;  %v5170_v44 = vsub.f32 %v4467_v25, %v5157_v55 }
 0x155   : > { %v1219_v37 = vand.u32 4294901760, %v5164_v16  ;;  %v1201_v21 = vand.u32 4294901760, %v1200_v17 }
 0x156   : > { %v1191_v10 = vand.u32 4294901760, %v1190_v3  ;;  %v1209_v47 = vand.u32 4294901760, %v5170_v44  ;;  %v1894_v3 = vld [vmem:[%s5720_s5 + $0x70] sm:$0xff] }
 0x157   : > { %v1220_v49 = vsub.f32 %v5164_v16, %v1219_v37 }
 0x158   : > { %3380 = vmatprep.mubr.f32.mxu1 %v1191_v10  ;;  %v1210_v59 = vsub.f32 %v5170_v44, %v1209_v47  ;;  %v5209_v10 = vld [vmem:[%s5720_s5 + $0x8] sm:$0xff] }
 0x159   : > { %3381 = vmatmul.mubr.f32.vlgmr.msra.gmra.mrb[4].mxu1 %v1201_v21  ;;  %v1221_v25 = vand.u32 4294901760, %v1220_v49  ;;  %v5204_v21 = vld [vmem:[%s5720_s5] sm:$0xff]  ;;  %v1895_v49 = vld [vmem:[%s5720_s5 + $0x78] sm:$0xff] }
 0x15a   : > { %4031 = vmatpush3.bf16.msra.mxu1 %v5008_v58  ;;  %v1211_v60 = vand.u32 4294901760, %v1210_v59  ;;  %v4064_v58 = vpack.c.bf16 %v5134_v27, %v5129_v56  ;;  %v1946_v59 = vand.u32 4294901760, %v1894_v3 }
 0x15b   : > { %4033 = vmatprep.subr.bf16.mxu1 %v4032_v8 }
 0x15c   : > { %3383 = vmatprep.mubr.f32.mxu1 %v1211_v60  ;;  %v1949_v60 = vand.u32 4294901760, %v1895_v49 }
 0x15d   : > { %3384 = vmatmul.mubr.f32.gmra.mrb[6].mxu1 %v1221_v25 }
 0x15e   : > { %4035 = vmatpush3.bf16.msra.mxu1 %v4032_v8  ;;  %3418 = vmatprep.mubr.f32.mxu1 %v5140_v15 }
 0x15f   : > { %4037 = vmatprep.subr.bf16.mxu1 %v5029_v13 }
 0x162   : > { %4039 = vmatpush3.bf16.msra.mxu1 %v5029_v13  ;;  %v5214_v13 = vld [vmem:[%s5720_s5 + $0x10] sm:$0xff] }
 0x163   : > { %4041 = vmatprep.subr.bf16.mxu1 %v5053_v31 }
 0x166   : > { %4043 = vmatpush3.bf16.msra.mxu1 %v5053_v31  ;;  %v1904_v31 = vand.u32 4294901760, %v5204_v21 }
 0x167   : > { %4045 = vmatprep.subr.bf16.mxu1 %v5057_v62 }
 0x168   : > { %v5388_v42 = vsub.f32 %v5204_v21, %v1904_v31  ;;  %v5405_v21 = vpack.c.bf16 %v1949_v60, %v1946_v59 }
 0x16a   : > { %4047 = vmatpush3.bf16.msra.mxu1 %v5057_v62  ;;  %v1907_v62 = vand.u32 4294901760, %v5209_v10  ;;  %v2027_v25 = vand.u32 4294901760, %v5388_v42 }
 0x16b   : > { %4049 = vmatprep.subr.bf16.mxu1 %v5071_v33 }
 0x16e   : > { %4051 = vmatpush3.bf16.msra.mxu1 %v5071_v33  ;;  %v5222_v33 = vld [vmem:[%s5720_s5 + $0x18] sm:$0xff] }
 0x16f   : > { %4053 = vmatprep.subr.bf16.mxu1 %v5091_v18 }
 0x172   : > { %4055 = vmatpush3.bf16.msra.mxu1 %v5091_v18  ;;  %v1910_v18 = vand.u32 4294901760, %v5214_v13 }
 0x173   : > { %4057 = vmatprep.subr.bf16.mxu1 %v5093_v32 }
 0x176   : > { %4059 = vmatpush3.bf16.msra.mxu1 %v5093_v32  ;;  %v1913_v32 = vand.u32 4294901760, %v5222_v33 }
 0x177   : > { %4061 = vmatprep.subr.bf16.mxu1 %v5097_v39 }
 0x178   : > { %v5237_v8 = vpack.c.bf16 %v1913_v32, %v1910_v18 }
 0x179   : > { %3419 = vmatmul.mubr.f32.vlgmr.msra.gmra.mrb[4].mxu1 %v5138_v54 }
 0x17a   : > { %3421 = vmatprep.mubr.f32.mxu1 %v5157_v55  ;;  %4063 = vmatpush3.bf16.msra.mxu1 %v5097_v39  ;;  %v5231_v39 = vpack.c.bf16 %v1907_v62, %v1904_v31 }
 0x17b   : > { %4065 = vmatprep.subr.bf16.mxu1 %v4064_v58 }
 0x17c   : > { %4189 = vmatprep.subr.bf16.mxu0 %v5231_v39 }
 0x17d   : > { %3422 = vmatmul.mubr.f32.gmra.mrb[6].mxu1 %v5154_v1  ;;  %4191 = vmatpush3.bf16.msra.mxu0 %v5231_v39 }
 0x17e   : > { %4067 = vmatpush3.bf16.msra.mxu1 %v4064_v58  ;;  %3456 = vmatprep.mubr.f32.mxu1 %v5152_v63 }
 0x17f   : > { %4069 = vmatprep.subr.bf16.mxu1 %v5101_v53  ;;  %4193 = vmatprep.subr.bf16.mxu0 %v5237_v8 }
 0x181   : > { %4195 = vmatpush3.bf16.msra.mxu0 %v5237_v8 }
 0x182   : > { %4071 = vmatpush3.bf16.msra.mxu1 %v5101_v53  ;;  %v4124_v53 = vpack.c.bf16 %v1237_v57, %v1230_v20  ;;  %v4132_v20 = vpack.c.bf16 %v5757_v11, %v5756_v9  ;;  %v5758_v57 = vand.u32 4294901760, %v5023_v48  ;;  %v5764_v48 = vand.u32 4294901760, %v5065_v43  ;;  %v1888_v43 = vld [vmem:[%s5720_s5 + $0x40] sm:$0xff] }
 0x183   : > { %4073 = vmatprep.subr.bf16.mxu1 %v5105_v61 }
 0x186   : > { %4075 = vmatpush3.bf16.msra.mxu1 %v5105_v61  ;;  %v5755_v61 = vand.u32 4294901760, %v5134_v27 }
 0x187   : > { %4077 = vmatprep.subr.bf16.mxu1 %v5109_v36 }
 0x18a   : > { %4079 = vmatpush3.bf16.msra.mxu1 %v5109_v36  ;;  %v4128_v36 = vpack.c.bf16 %v5755_v61, %v1244_v24 }
 0x18b   : > { %4081 = vmatprep.subr.bf16.mxu1 %v5113_v4 }
 0x18e   : > { %4083 = vmatpush3.bf16.msra.mxu1 %v5113_v4  ;;  %v5759_v4 = vand.u32 4294901760, %v5025_v52  ;;  %v5765_v52 = vand.u32 4294901760, %v5067_v19  ;;  %v1889_v19 = vld [vmem:[%s5720_s5 + $0x48] sm:$0xff] }
 0x18f   : > { %4085 = vmatprep.subr.bf16.mxu1 %v5117_v6  ;;  %v1931_v30 = vand.u32 4294901760, %v1889_v19 }
 0x190   : > { %v4148_v56 = vpack.c.bf16 %v5765_v52, %v5764_v48 }
 0x192   : > { %4087 = vmatpush3.bf16.msra.mxu1 %v5117_v6  ;;  %v5763_v6 = vand.u32 4294901760, %v5051_v12 }
 0x193   : > { %4089 = vmatprep.subr.bf16.mxu1 %v5121_v14 }
 0x196   : > { %4091 = vmatpush3.bf16.msra.mxu1 %v5121_v14 }
 0x197   : > { %4093 = vmatprep.subr.bf16.mxu1 %v4913_v45 }
 0x199   : > { %3457 = vmatmul.mubr.f32.vlgmr.msra.gmra.mrb[4].mxu1 %v5143_v51 }
 0x19a   : > { %3459 = vmatprep.mubr.f32.mxu1 %v5170_v44  ;;  %4095 = vmatpush3.bf16.msra.mxu1 %v4913_v45  ;;  %v4136_v44 = vpack.c.bf16 %v5759_v4, %v5758_v57 }
 0x19b   : > { %4097 = vmatprep.subr.bf16.mxu1 %v4923_v0 }
 0x19d   : > { %3460 = vmatmul.mubr.f32.gmra.mrb[6].mxu1 %v5164_v16  ;;  %v5393_v16 = vsub.f32 %v5209_v10, %v1907_v62  ;;  %v2028_v10 = vsub.f32 %v5388_v42, %v2027_v25 }
 0x19e   : > { %4099 = vmatpush3.bf16.msra.mxu1 %v4923_v0  ;;  %3494 = vmatprep.mubr.f32.mxu1 %v1189_v28 }
 0x19f   : > { %4101 = vmatprep.subr.bf16.mxu1 %v4940_v2  ;;  %v2034_v58 = vand.u32 4294901760, %v5393_v16  ;;  %v2029_v62 = vand.u32 4294901760, %v2028_v10 }
 0x1a1   : > { %v2035_v31 = vsub.f32 %v5393_v16, %v2034_v58 }
 0x1a2   : > { %4103 = vmatpush3.bf16.msra.mxu1 %v4940_v2 }
 0x1a3   : > { %4105 = vmatprep.subr.bf16.mxu1 %v4950_v38 }
 0x1a6   : > { %4107 = vmatpush3.bf16.msra.mxu1 %v4950_v38 }
 0x1a7   : > { %4109 = vmatprep.subr.bf16.mxu1 %v4960_v40 }
 0x1aa   : > { %4111 = vmatpush3.bf16.msra.mxu1 %v4960_v40 }
 0x1ab   : > { %4113 = vmatprep.subr.bf16.mxu1 %v4970_v35 }
 0x1ae   : > { %4115 = vmatpush3.bf16.msra.mxu1 %v4970_v35 }
 0x1af   : > { %4117 = vmatprep.subr.bf16.mxu1 %v4980_v50 }
 0x1b2   : > { %4119 = vmatpush3.bf16.msra.mxu1 %v4980_v50 }
 0x1b3   : > { %4121 = vmatprep.subr.bf16.mxu1 %v4998_v46 }
 0x1b6   : > { %4123 = vmatpush3.bf16.msra.mxu1 %v4998_v46 }
 0x1b7   : > { %4125 = vmatprep.subr.bf16.mxu1 %v4124_v53 }
 0x1b9   : > { %3495 = vmatmul.mubr.f32.vlgmr.msra.gmra.mrb[4].mxu1 %v1199_v41  ;;  %v1892_v41 = vld [vmem:[%s5720_s5 + $0x60] sm:$0xff] }
 0x1ba   : > { %3497 = vmatprep.mubr.f32.mxu1 %v1209_v47  ;;  %4127 = vmatpush3.bf16.msra.mxu1 %v4124_v53  ;;  %v5760_v47 = vand.u32 4294901760, %v5034_v26  ;;  %v5766_v26 = vand.u32 4294901760, %v5076_v34  ;;  %v1928_v34 = vand.u32 4294901760, %v1888_v43  ;;  %v1940_v28 = vand.u32 4294901760, %v1892_v41 }
 0x1bb   : > { %4129 = vmatprep.subr.bf16.mxu1 %v4128_v36  ;;  %v2036_v53 = vand.u32 4294901760, %v2035_v31 }
 0x1bc   : > { %v4140_v29 = vpack.c.bf16 %v5761_v7, %v5760_v47  ;;  %v4152_v27 = vpack.c.bf16 %v5767_v22, %v5766_v26  ;;  %v5363_v24 = vpack.c.bf16 %v1931_v30, %v1928_v34  ;;  %v5441_v52 = vsub.f32 %v1888_v43, %v1928_v34 }
 0x1bd   : > { %3498 = vmatmul.mubr.f32.gmra.mrb[6].mxu1 %v1219_v37  ;;  %v5762_v37 = vand.u32 4294901760, %v5049_v5  ;;  %v5415_v61 = vpack.c.bf16 %v2036_v53, %v2029_v62 }
 0x1be   : > { %4131 = vmatpush3.bf16.msra.mxu1 %v4128_v36  ;;  %3532 = vmatprep.mubr.f32.mxu1 %v5140_v15 }
 0x1bf   : > { %4133 = vmatprep.subr.bf16.mxu1 %v4132_v20  ;;  %v4144_v14 = vpack.c.bf16 %v5763_v6, %v5762_v37 }
 0x1c2   : > { %4135 = vmatpush3.bf16.msra.mxu1 %v4132_v20 }
 0x1c3   : > { %4137 = vmatprep.subr.bf16.mxu1 %v4136_v44 }
 0x1c6   : > { %4139 = vmatpush3.bf16.msra.mxu1 %v4136_v44 }
 0x1c7   : > { %4141 = vmatprep.subr.bf16.mxu1 %v4140_v29 }
 0x1ca   : > { %4143 = vmatpush3.bf16.msra.mxu1 %v4140_v29 }
 0x1cb   : > { %4145 = vmatprep.subr.bf16.mxu1 %v4144_v14 }
 0x1ce   : > { %4147 = vmatpush3.bf16.msra.mxu1 %v4144_v14 }
 0x1cf   : > { %4149 = vmatprep.subr.bf16.mxu1 %v4148_v56 }
 0x1d2   : > { %4151 = vmatpush3.bf16.msra.mxu1 %v4148_v56  ;;  %v5443_v56 = vsub.f32 %v1889_v19, %v1931_v30 }
 0x1d3   : > { %4153 = vmatprep.subr.bf16.mxu1 %v4152_v27 }
 0x1d6   : > { %4155 = vmatpush3.bf16.msra.mxu1 %v4152_v27  ;;  %v5746_v27 = vand.u32 4294901760, %v5441_v52 }
 0x1d7   : > { %4157 = vmatprep.subr.bf16.mxu1 %v4913_v45 }
 0x1d9   : > { %3533 = vmatmul.mubr.f32.vlgmr.msra.gmra.mrb[4].mxu1 %v5138_v54 }
 0x1da   : > { %3535 = vmatprep.mubr.f32.mxu1 %v5157_v55  ;;  %4159 = vmatpush3.bf16.msra.mxu1 %v4913_v45  ;;  %v1884_v45 = vld [vmem:[%s5720_s5 + $0x20] sm:$0xff] }
 0x1db   : > { %4161 = vmatprep.subr.bf16.mxu1 %v4923_v0 }
 0x1dd   : > { %3536 = vmatmul.mubr.f32.gmra.mrb[6].mxu1 %v5154_v1 }
 0x1de   : > { %4163 = vmatpush3.bf16.msra.mxu1 %v4923_v0  ;;  %3570 = vmatprep.mubr.f32.mxu1 %v5140_v15  ;;  %v1885_v0 = vld [vmem:[%s5720_s5 + $0x28] sm:$0xff]  ;;  %v1891_v15 = vld [vmem:[%s5720_s5 + $0x58] sm:$0xff] }
 0x1df   : > { %4165 = vmatprep.subr.bf16.mxu1 %v4940_v2  ;;  %v1937_v63 = vand.u32 4294901760, %v1891_v15 }
 0x1e2   : > { %4167 = vmatpush3.bf16.msra.mxu1 %v4940_v2  ;;  %v1916_v2 = vand.u32 4294901760, %v1884_v45 }
 0x1e3   : > { %4169 = vmatprep.subr.bf16.mxu1 %v4950_v38 }
 0x1e4   : > { %v5417_v36 = vsub.f32 %v1884_v45, %v1916_v2  ;;  %v5745_v45 = vand.u32 4294901760, %v5443_v56 }
 0x1e6   : > { %4171 = vmatpush3.bf16.msra.mxu1 %v4950_v38  ;;  %v1919_v38 = vand.u32 4294901760, %v1885_v0  ;;  %v5750_v11 = vand.u32 4294901760, %v5417_v36 }
 0x1e7   : > { %4173 = vmatprep.subr.bf16.mxu1 %v4960_v40 }
 0x1e8   : > { %v5419_v9 = vsub.f32 %v1885_v0, %v1919_v38  ;;  %v2056_v57 = vsub.f32 %v5417_v36, %v5750_v11 }
 0x1ea   : > { %4175 = vmatpush3.bf16.msra.mxu1 %v4960_v40  ;;  %v5343_v40 = vpack.c.bf16 %v1919_v38, %v1916_v2  ;;  %v5749_v20 = vand.u32 4294901760, %v5419_v9  ;;  %v2057_v7 = vand.u32 4294901760, %v2056_v57  ;;  %v2084_v2 = vsub.f32 %v5441_v52, %v5746_v27 }
 0x1eb   : > { %4177 = vmatprep.subr.bf16.mxu1 %v4970_v35  ;;  %v2091_v38 = vsub.f32 %v5443_v56, %v5745_v45 }
 0x1ec   : > { %4197 = vmatprep.subr.bf16.mxu0 %v5343_v40  ;;  %v2063_v4 = vsub.f32 %v5419_v9, %v5749_v20 }
 0x1ed   : > { %4199 = vmatpush3.bf16.msra.mxu0 %v5343_v40  ;;  %v2092_v43 = vand.u32 4294901760, %v2091_v38 }
 0x1ee   : > { %4179 = vmatpush3.bf16.msra.mxu1 %v4970_v35  ;;  %v1886_v35 = vld [vmem:[%s5720_s5 + $0x30] sm:$0xff]  ;;  %v2064_v29 = vand.u32 4294901760, %v2063_v4 }
 0x1ef   : > { %4181 = vmatprep.subr.bf16.mxu1 %v4980_v50 }
 0x1f0   : > { %v5436_v14 = vpack.c.bf16 %v2064_v29, %v2057_v7  ;;  %v5483_v7 = vsub.f32 %v1894_v3, %v1946_v59  ;;  %v5485_v29 = vsub.f32 %v1895_v49, %v1949_v60 }
 0x1f2   : > { %4183 = vmatpush3.bf16.msra.mxu1 %v4980_v50  ;;  %v1887_v50 = vld [vmem:[%s5720_s5 + $0x38] sm:$0xff] }
 0x1f3   : > { %4185 = vmatprep.subr.bf16.mxu1 %v4998_v46  ;;  %v1925_v5 = vand.u32 4294901760, %v1887_v50 }
 0x1f5   : > { %v5432_v47 = vsub.f32 %v1887_v50, %v1925_v5  ;;  %v5458_v50 = vsub.f32 %v1891_v15, %v1937_v63  ;;  %v5472_v15 = vsub.f32 %v1892_v41, %v1940_v28 }
 0x1f6   : > { %4187 = vmatpush3.bf16.msra.mxu1 %v4998_v46  ;;  %v1922_v46 = vand.u32 4294901760, %v1886_v35 }
 0x1f7   : > { %v5747_v6 = vand.u32 4294901760, %v5432_v47  ;;  %v5743_v34 = vand.u32 4294901760, %v5458_v50  ;;  %v5742_v62 = vand.u32 4294901760, %v5472_v15 }
 0x1f8   : > { %v5353_v12 = vpack.c.bf16 %v1925_v5, %v1922_v46  ;;  %v5430_v44 = vsub.f32 %v1886_v35, %v1922_v46  ;;  %v2085_v5 = vand.u32 4294901760, %v2084_v2  ;;  %v5508_v2 = vpack.c.bf16 %v5419_v9, %v5417_v36 }
 0x1f9   : > { %3571 = vmatmul.mubr.f32.vlgmr.msra.gmra.mrb[4].mxu1 %v5138_v54  ;;  %v1890_v54 = vld [vmem:[%s5720_s5 + $0x50] sm:$0xff]  ;;  %v2077_v26 = vsub.f32 %v5432_v47, %v5747_v6  ;;  %v2112_v4 = vsub.f32 %v5472_v15, %v5742_v62 }
 0x1fa   : > { %3573 = vmatprep.mubr.f32.mxu1 %v5157_v55  ;;  %4201 = vmatprep.subr.bf16.mxu0 %v5353_v12  ;;  %v1934_v51 = vand.u32 4294901760, %v1890_v54  ;;  %v1893_v55 = vld [vmem:[%s5720_s5 + $0x68] sm:$0xff]  ;;  %v5748_v37 = vand.u32 4294901760, %v5430_v44  ;;  %v5464_v30 = vpack.c.bf16 %v2092_v43, %v2085_v5  ;;  %v5512_v38 = vpack.c.bf16 %v5432_v47, %v5430_v44 }
 0x1fb   : > { %4203 = vmatpush3.bf16.msra.mxu0 %v5353_v12  ;;  %v1943_v17 = vand.u32 4294901760, %v1893_v55  ;;  %v2078_v0 = vand.u32 4294901760, %v2077_v26  ;;  %v5516_v5 = vpack.c.bf16 %v5443_v56, %v5441_v52 }
 0x1fc   : > { %4205 = vmatprep.subr.bf16.mxu0 %v5363_v24  ;;  %v2070_v48 = vsub.f32 %v5430_v44, %v5748_v37  ;;  %v5456_v35 = vsub.f32 %v1890_v54, %v1934_v51  ;;  %v2105_v54 = vsub.f32 %v5458_v50, %v5743_v34 }
 0x1fd   : > { %3574 = vmatmul.mubr.f32.gmra.mrb[6].mxu1 %v5154_v1  ;;  %v5373_v1 = vpack.c.bf16 %v1937_v63, %v1934_v51  ;;  %v5383_v23 = vpack.c.bf16 %v1943_v17, %v1940_v28  ;;  %v5474_v51 = vsub.f32 %v1893_v55, %v1943_v17  ;;  %v2113_v55 = vand.u32 4294901760, %v2112_v4 }
 0x1fe   : > { %v2071_v22 = vand.u32 4294901760, %v2070_v48  ;;  %v5744_v19 = vand.u32 4294901760, %v5456_v35  ;;  %v2106_v31 = vand.u32 4294901760, %v2105_v54  ;;  %v5740_v28 = vand.u32 4294901760, %v5483_v7 }
 0x1ff   : > { %4207 = vmatpush3.bf16.msra.mxu0 %v5363_v24  ;;  %v5741_v53 = vand.u32 4294901760, %v5474_v51  ;;  %v5739_v17 = vand.u32 4294901760, %v5485_v29  ;;  %v5520_v43 = vpack.c.bf16 %v5458_v50, %v5456_v35  ;;  %v5528_v54 = vpack.c.bf16 %v5485_v29, %v5483_v7 }
 0x200   : > { %4209 = vmatprep.subr.bf16.mxu0 %v5373_v1  ;;  %v5460_v46 = vpack.c.bf16 %v2078_v0, %v2071_v22  ;;  %v2098_v10 = vsub.f32 %v5456_v35, %v5744_v19  ;;  %v2126_v26 = vsub.f32 %v5483_v7, %v5740_v28  ;;  %v5504_v0 = vpack.c.bf16 %v5393_v16, %v5388_v42 }
 0x201   : > { %v2119_v41 = vsub.f32 %v5474_v51, %v5741_v53  ;;  %v2133_v3 = vsub.f32 %v5485_v29, %v5739_v17  ;;  %v5541_v17 = vsub.f32 %v5222_v33, %v1913_v32  ;;  %v5769_v42 = vand.u32 4294901760, %v5417_v36 }
 0x202   : > { %v2099_v63 = vand.u32 4294901760, %v2098_v10  ;;  %v2127_v59 = vand.u32 4294901760, %v2126_v26  ;;  %v5524_v10 = vpack.c.bf16 %v5474_v51, %v5472_v15  ;;  %v5770_v16 = vand.u32 4294901760, %v5419_v9 }
 0x203   : > { %4211 = vmatpush3.bf16.msra.mxu0 %v5373_v1  ;;  %v2120_v48 = vand.u32 4294901760, %v2119_v41  ;;  %v2134_v60 = vand.u32 4294901760, %v2133_v3  ;;  %v5774_v36 = vand.u32 4294901760, %v5443_v56  ;;  %v5780_v56 = vand.u32 4294901760, %v5485_v29 }
 0x204   : > { %4213 = vmatprep.subr.bf16.mxu0 %v5383_v23  ;;  %v5478_v57 = vpack.c.bf16 %v2106_v31, %v2099_v63  ;;  %v2756_v63 = vld [vmem:[%s5719_s4] ss:$0 sm:$0xff] }
 0x205   : > { %v5498_v49 = vpack.c.bf16 %v2120_v48, %v2113_v55  ;;  %v5500_v22 = vpack.c.bf16 %v2134_v60, %v2127_v59  ;;  %v5536_v60 = vsub.f32 %v5214_v13, %v1910_v18 }
 0x207   : > { %4215 = vmatpush3.bf16.msra.mxu0 %v5383_v23 }
 0x208   : > { %4217 = vmatprep.subr.bf16.mxu0 %v5405_v21 }
 0x20b   : > { %4219 = vmatpush3.bf16.msra.mxu0 %v5405_v21 }
 0x20c   : > { %4221 = vmatprep.subr.bf16.mxu0 %v5415_v61 }
 0x2cc   : > { %v3572_v31 = vpop.f32.mrb[4].mxu1 }
 0x2cd   : > { %v4388_v4 = vadd.f32 %v3572_v31, %v2756_v63  ;;  %v1854_v41 = vpop.f32.mrb[5].mxu1  ;;  %v2041_v31 = vand.u32 4294901760, %v5536_v60 }
 0x2ce   : > { %v4389_v55 = vadd.f32 %v2756_v63, %v1854_v41 }
 0x2cf   : > { %4468 = vtanh.f32 %v4388_v4  ;;  %v5751_v4 = vand.u32 4294901760, %v5541_v17  ;;  %v2042_v13 = vsub.f32 %v5536_v60, %v2041_v31 }
 0x2d0   : > { %4470 = vtanh.f32 %v4389_v55  ;;  %v3575_v48 = vpop.f32.mrb[6].mxu1 }
 0x2d1   : > { %v4390_v26 = vadd.f32 %v3575_v48, %v2756_v63  ;;  %v1866_v3 = vpop.f32.mrb[7].mxu1  ;;  %v2049_v33 = vsub.f32 %v5541_v17, %v5751_v4  ;;  %v2043_v34 = vand.u32 4294901760, %v2042_v13 }
 0x2d2   : > { %v4391_v59 = vadd.f32 %v2756_v63, %v1866_v3 }
 0x2d3   : > { %4472 = vtanh.f32 %v4390_v26  ;;  %v2050_v19 = vand.u32 4294901760, %v2049_v33 }
 0x2d4   : > { %4474 = vtanh.f32 %v4391_v59 }
 0x2d5   : > { %v4224_v4 = vpack.c.bf16 %v2050_v19, %v2043_v34 }
 0x2d9   : > { %v4469_v41 = vpop.eup %4468 }
 0x2da   : > { %v4471_v55 = vpop.eup %4470  ;;  %v5545_v48 = vand.u32 4294901760, %v4469_v41 }
 0x2db   : > { %v5547_v63 = vand.u32 4294901760, %v4471_v55 }
 0x2dc   : > { %v5550_v26 = vsub.f32 %v4469_v41, %v5545_v48 }
 0x2dd   : > { %v4473_v18 = vpop.eup %4472  ;;  %v5559_v32 = vsub.f32 %v4471_v55, %v5547_v63 }
 0x2de   : > { %v4475_v3 = vpop.eup %4474  ;;  %v5561_v59 = vand.u32 4294901760, %v4473_v18  ;;  %v1996_v28 = vand.u32 4294901760, %v5550_v26 }
 0x2df   : > { %v5564_v53 = vand.u32 4294901760, %v4475_v3  ;;  %v1986_v41 = vand.u32 4294901760, %v5559_v32 }
 0x2e0   : > { %v1997_v62 = vsub.f32 %v5550_v26, %v1996_v28  ;;  %v5571_v45 = vsub.f32 %v4473_v18, %v5561_v59 }
 0x2e1   : > { %v1987_v55 = vsub.f32 %v5559_v32, %v1986_v41  ;;  %v5577_v27 = vsub.f32 %v4475_v3, %v5564_v53 }
 0x2e2   : > { %v2016_v6 = vand.u32 4294901760, %v5571_v45  ;;  %v1998_v11 = vand.u32 4294901760, %v1997_v62 }
 0x2e3   : > { %v1988_v37 = vand.u32 4294901760, %v1987_v55  ;;  %v2006_v20 = vand.u32 4294901760, %v5577_v27 }
 0x2e4   : > { %v2017_v13 = vsub.f32 %v5571_v45, %v2016_v6 }
 0x2e5   : > { %3608 = vmatprep.mubr.f32.mxu0 %v1988_v37  ;;  %v2007_v33 = vsub.f32 %v5577_v27, %v2006_v20  ;;  %v5768_v37 = vand.u32 4294901760, %v5541_v17 }
 0x2e6   : > { %3609 = vmatmul.mubr.f32.vlgmr.msra.gmra.mrb[4].mxu0 %v1998_v11  ;;  %v2018_v3 = vand.u32 4294901760, %v2017_v13  ;;  %v4316_v11 = vpack.c.bf16 %v2034_v58, %v2027_v25  ;;  %v4324_v25 = vpack.c.bf16 %v5770_v16, %v5769_v42  ;;  %v5771_v58 = vand.u32 4294901760, %v5430_v44 }
 0x2e7   : > { %4223 = vmatpush3.bf16.msra.mxu0 %v5415_v61  ;;  %v2008_v18 = vand.u32 4294901760, %v2007_v33  ;;  %v4256_v61 = vpack.c.bf16 %v5541_v17, %v5536_v60  ;;  %v5777_v44 = vand.u32 4294901760, %v5472_v15 }
 0x2e8   : > { %4225 = vmatprep.subr.bf16.mxu0 %v4224_v4 }
 0x2e9   : > { %3611 = vmatprep.mubr.f32.mxu0 %v2008_v18 }
 0x2ea   : > { %3612 = vmatmul.mubr.f32.gmra.mrb[6].mxu0 %v2018_v3 }
 0x2eb   : > { %4227 = vmatpush3.bf16.msra.mxu0 %v4224_v4  ;;  %3646 = vmatprep.mubr.f32.mxu0 %v5547_v63 }
 0x2ec   : > { %4229 = vmatprep.subr.bf16.mxu0 %v5436_v14 }
 0x2ef   : > { %4231 = vmatpush3.bf16.msra.mxu0 %v5436_v14  ;;  %v4320_v14 = vpack.c.bf16 %v5768_v37, %v2041_v31 }
 0x2f0   : > { %4233 = vmatprep.subr.bf16.mxu0 %v5460_v46 }
 0x2f3   : > { %4235 = vmatpush3.bf16.msra.mxu0 %v5460_v46  ;;  %v5772_v46 = vand.u32 4294901760, %v5432_v47  ;;  %v5778_v47 = vand.u32 4294901760, %v5474_v51 }
 0x2f4   : > { %4237 = vmatprep.subr.bf16.mxu0 %v5464_v30 }
 0x2f5   : > { %v4340_v34 = vpack.c.bf16 %v5778_v47, %v5777_v44 }
 0x2f7   : > { %4239 = vmatpush3.bf16.msra.mxu0 %v5464_v30 }
 0x2f8   : > { %4241 = vmatprep.subr.bf16.mxu0 %v5478_v57 }
 0x2fb   : > { %4243 = vmatpush3.bf16.msra.mxu0 %v5478_v57 }
 0x2fc   : > { %4245 = vmatprep.subr.bf16.mxu0 %v5498_v49 }
 0x2ff   : > { %4247 = vmatpush3.bf16.msra.mxu0 %v5498_v49 }
 0x300   : > { %4249 = vmatprep.subr.bf16.mxu0 %v5500_v22 }
 0x303   : > { %4251 = vmatpush3.bf16.msra.mxu0 %v5500_v22 }
 0x304   : > { %4253 = vmatprep.subr.bf16.mxu0 %v5504_v0 }
 0x306   : > { %3647 = vmatmul.mubr.f32.vlgmr.msra.gmra.mrb[4].mxu0 %v5545_v48 }
 0x307   : > { %3649 = vmatprep.mubr.f32.mxu0 %v5564_v53  ;;  %4255 = vmatpush3.bf16.msra.mxu0 %v5504_v0 }
 0x308   : > { %4257 = vmatprep.subr.bf16.mxu0 %v4256_v61 }
 0x30a   : > { %3650 = vmatmul.mubr.f32.gmra.mrb[6].mxu0 %v5561_v59 }
 0x30b   : > { %4259 = vmatpush3.bf16.msra.mxu0 %v4256_v61  ;;  %3684 = vmatprep.mubr.f32.mxu0 %v5559_v32 }
 0x30c   : > { %4261 = vmatprep.subr.bf16.mxu0 %v5508_v2 }
 0x30f   : > { %4263 = vmatpush3.bf16.msra.mxu0 %v5508_v2 }
 0x310   : > { %4265 = vmatprep.subr.bf16.mxu0 %v5512_v38 }
 0x313   : > { %4267 = vmatpush3.bf16.msra.mxu0 %v5512_v38 }
 0x314   : > { %4269 = vmatprep.subr.bf16.mxu0 %v5516_v5 }
 0x317   : > { %4271 = vmatpush3.bf16.msra.mxu0 %v5516_v5 }
 0x318   : > { %4273 = vmatprep.subr.bf16.mxu0 %v5520_v43 }
 0x31b   : > { %4275 = vmatpush3.bf16.msra.mxu0 %v5520_v43 }
 0x31c   : > { %4277 = vmatprep.subr.bf16.mxu0 %v5524_v10 }
 0x31f   : > { %4279 = vmatpush3.bf16.msra.mxu0 %v5524_v10 }
 0x320   : > { %4281 = vmatprep.subr.bf16.mxu0 %v5528_v54 }
 0x323   : > { %4283 = vmatpush3.bf16.msra.mxu0 %v5528_v54 }
 0x324   : > { %4285 = vmatprep.subr.bf16.mxu0 %v5231_v39 }
 0x326   : > { %3685 = vmatmul.mubr.f32.vlgmr.msra.gmra.mrb[4].mxu0 %v5550_v26 }
 0x327   : > { %3687 = vmatprep.mubr.f32.mxu0 %v5577_v27  ;;  %4287 = vmatpush3.bf16.msra.mxu0 %v5231_v39  ;;  %v4328_v27 = vpack.c.bf16 %v5772_v46, %v5771_v58 }
 0x328   : > { %4289 = vmatprep.subr.bf16.mxu0 %v5237_v8 }
 0x32a   : > { %3688 = vmatmul.mubr.f32.gmra.mrb[6].mxu0 %v5571_v45  ;;  %v5776_v45 = vand.u32 4294901760, %v5458_v50 }
 0x32b   : > { %4291 = vmatpush3.bf16.msra.mxu0 %v5237_v8  ;;  %3722 = vmatprep.mubr.f32.mxu0 %v1986_v41 }
 0x32c   : > { %4293 = vmatprep.subr.bf16.mxu0 %v5343_v40 }
 0x32f   : > { %4295 = vmatpush3.bf16.msra.mxu0 %v5343_v40 }
 0x330   : > { %4297 = vmatprep.subr.bf16.mxu0 %v5353_v12 }
 0x333   : > { %4299 = vmatpush3.bf16.msra.mxu0 %v5353_v12 }
 0x334   : > { %4301 = vmatprep.subr.bf16.mxu0 %v5363_v24 }
 0x337   : > { %4303 = vmatpush3.bf16.msra.mxu0 %v5363_v24 }
 0x338   : > { %4305 = vmatprep.subr.bf16.mxu0 %v5373_v1 }
 0x33b   : > { %4307 = vmatpush3.bf16.msra.mxu0 %v5373_v1 }
 0x33c   : > { %4309 = vmatprep.subr.bf16.mxu0 %v5383_v23 }
 0x33f   : > { %4311 = vmatpush3.bf16.msra.mxu0 %v5383_v23 }
 0x340   : > { %4313 = vmatprep.subr.bf16.mxu0 %v5405_v21 }
 0x343   : > { %4315 = vmatpush3.bf16.msra.mxu0 %v5405_v21 }
 0x344   : > { %4317 = vmatprep.subr.bf16.mxu0 %v4316_v11 }
 0x346   : > { %3723 = vmatmul.mubr.f32.vlgmr.msra.gmra.mrb[4].mxu0 %v1996_v28 }
 0x347   : > { %3725 = vmatprep.mubr.f32.mxu0 %v2006_v20  ;;  %4319 = vmatpush3.bf16.msra.mxu0 %v4316_v11  ;;  %v5773_v20 = vand.u32 4294901760, %v5441_v52  ;;  %v5779_v52 = vand.u32 4294901760, %v5483_v7 }
 0x348   : > { %4321 = vmatprep.subr.bf16.mxu0 %v4320_v14 }
 0x349   : > { %v4332_v9 = vpack.c.bf16 %v5774_v36, %v5773_v20  ;;  %v4344_v30 = vpack.c.bf16 %v5780_v56, %v5779_v52 }
 0x34a   : > { %3726 = vmatmul.mubr.f32.gmra.mrb[6].mxu0 %v2016_v6  ;;  %v5775_v6 = vand.u32 4294901760, %v5456_v35 }
 0x34b   : > { %4323 = vmatpush3.bf16.msra.mxu0 %v4320_v14  ;;  %3760 = vmatprep.mubr.f32.mxu0 %v5547_v63 }
 0x34c   : > { %4325 = vmatprep.subr.bf16.mxu0 %v4324_v25  ;;  %v4336_v19 = vpack.c.bf16 %v5776_v45, %v5775_v6 }
 0x34f   : > { %4327 = vmatpush3.bf16.msra.mxu0 %v4324_v25 }
 0x350   : > { %4329 = vmatprep.subr.bf16.mxu0 %v4328_v27 }
 0x353   : > { %4331 = vmatpush3.bf16.msra.mxu0 %v4328_v27 }
 0x354   : > { %4333 = vmatprep.subr.bf16.mxu0 %v4332_v9 }
 0x357   : > { %4335 = vmatpush3.bf16.msra.mxu0 %v4332_v9 }
 0x358   : > { %4337 = vmatprep.subr.bf16.mxu0 %v4336_v19 }
 0x35b   : > { %4339 = vmatpush3.bf16.msra.mxu0 %v4336_v19 }
 0x35c   : > { %4341 = vmatprep.subr.bf16.mxu0 %v4340_v34 }
 0x35f   : > { %4343 = vmatpush3.bf16.msra.mxu0 %v4340_v34 }
 0x360   : > { %4345 = vmatprep.subr.bf16.mxu0 %v4344_v30 }
 0x363   : > { %4347 = vmatpush3.bf16.msra.mxu0 %v4344_v30 }
 0x364   : > { %4349 = vmatprep.subr.bf16.mxu0 %v5231_v39 }
 0x366   : > { %3761 = vmatmul.mubr.f32.vlgmr.msra.gmra.mrb[4].mxu0 %v5545_v48 }
 0x367   : > { %3763 = vmatprep.mubr.f32.mxu0 %v5564_v53  ;;  %4351 = vmatpush3.bf16.msra.mxu0 %v5231_v39  ;;  %v2757_v39 = vld [vmem:[%s5721_s6] ss:$0 sm:$0xff] }
 0x368   : > { %4353 = vmatprep.subr.bf16.mxu0 %v5237_v8 }
 0x36a   : > { %3764 = vmatmul.mubr.f32.gmra.mrb[6].mxu0 %v5561_v59 }
 0x36b   : > { %4355 = vmatpush3.bf16.msra.mxu0 %v5237_v8  ;;  %3798 = vmatprep.mubr.f32.mxu0 %v5547_v63 }
 0x36c   : > { %4357 = vmatprep.subr.bf16.mxu0 %v5343_v40 }
 0x36f   : > { %4359 = vmatpush3.bf16.msra.mxu0 %v5343_v40 }
 0x370   : > { %4361 = vmatprep.subr.bf16.mxu0 %v5353_v12 }
 0x373   : > { %4363 = vmatpush3.bf16.msra.mxu0 %v5353_v12 }
 0x374   : > { %4365 = vmatprep.subr.bf16.mxu0 %v5363_v24 }
 0x377   : > { %4367 = vmatpush3.bf16.msra.mxu0 %v5363_v24 }
 0x378   : > { %4369 = vmatprep.subr.bf16.mxu0 %v5373_v1 }
 0x37b   : > { %4371 = vmatpush3.bf16.msra.mxu0 %v5373_v1 }
 0x37c   : > { %4373 = vmatprep.subr.bf16.mxu0 %v5383_v23 }
 0x37f   : > { %4375 = vmatpush3.bf16.msra.mxu0 %v5383_v23 }
 0x380   : > { %4377 = vmatprep.subr.bf16.mxu0 %v5405_v21 }
 0x383   : > { %4379 = vmatpush3.bf16.msra.mxu0 %v5405_v21 }
 0x386   : > { %3799 = vmatmul.mubr.f32.vlgmr.msra.gmra.mrb[4].mxu0 %v5545_v48 }
 0x387   : > { %3801 = vmatprep.mubr.f32.mxu0 %v5564_v53 }
 0x38a   : > { %3802 = vmatmul.mubr.f32.gmra.mrb[6].mxu0 %v5561_v59 }
 0x459   : > { %v3800_v8 = vpop.f32.mrb[4].mxu0 }
 0x45a   : > { %v4392_v40 = vadd.f32 %v3800_v8, %v2757_v39  ;;  %v2651_v12 = vpop.f32.mrb[5].mxu0 }
 0x45b   : > { %v4393_v24 = vadd.f32 %v2757_v39, %v2651_v12 }
 0x45c   : > { %4476 = vtanh.f32 %v4392_v40 }
 0x45d   : > { %4478 = vtanh.f32 %v4393_v24  ;;  %v3803_v1 = vpop.f32.mrb[6].mxu0 }
 0x45e   : > { %v4394_v23 = vadd.f32 %v3803_v1, %v2757_v39  ;;  %v2663_v21 = vpop.f32.mrb[7].mxu0 }
 0x45f   : > { %v4395_v35 = vadd.f32 %v2757_v39, %v2663_v21 }
 0x460   : > { %4480 = vtanh.f32 %v4394_v23 }
 0x461   : > { %4482 = vtanh.f32 %v4395_v35 }
 0x466   : > { %v4477_v50 = vpop.eup %4476 }
 0x467   : > { %v4479_v15 = vpop.eup %4478  ;;  %v2678_v51 = vmul.f32 0.5, %v4477_v50 }
 0x468   : > { %v2677_v62 = vmul.f32 0.5, %v4479_v15 }
 0x469   : > { %v2682_v29 = vadd.f32 0.5, %v2678_v51 }
 0x46a   : > { %v4481_v53 = vpop.eup %4480  ;;  %v2681_v57 = vadd.f32 0.5, %v2677_v62 }
 0x46b   : > { %v4483_v7 = vpop.eup %4482  ;;  %v2680_v28 = vmul.f32 0.5, %v4481_v53  ;;  %2687 = vst.msk [vmem:[%s280_s11 + $0x8] sm:$0xff] %vm2685_vm0, %v2682_v29 }
 0x46c   : > { %2686 = vst.msk [vmem:[%s280_s11] sm:$0xff] %vm2685_vm0, %v2681_v57  ;;  %v2679_v17 = vmul.f32 0.5, %v4483_v7 }
 0x46d   : > { %v2684_v22 = vadd.f32 0.5, %v2680_v28 }
 0x46e   : > { %v2683_v49 = vadd.f32 0.5, %v2679_v17 }
 0x46f   : > { %2689 = vst.msk [vmem:[%s280_s11 + $0x18] sm:$0xff] %vm2685_vm0, %v2684_v22 }
 0x470   : > { %2688 = vst.msk [vmem:[%s280_s11 + $0x10] sm:$0xff] %vm2685_vm0, %v2683_v49 }
 0x471 PF: > { %s17_s24 = sadd.s32 1, %s4490_s24  }
 0x472   : > { %p14_p4 = scmp.ge.s32.totalorder %s17_s24, 4  }
 0x474   :  { %16 = sbr.rel (!%p14_p4) target bundleno = 1 (0x1), region = 78 }

</bundles_post_ra>
